<compile_context>
chip_gen: v6e
topology: v6e:2x2x1
jax: 0.10.0
libtpu: 0.0.40
codegen_flags: <defaults>
</compile_context>

<pallas_src>
import jax
import jax.numpy as jnp
from jax.experimental import pallas as pl
from jax.experimental.pallas import tpu as pltpu  # noqa: F401  (TPU backend)

# problem sizes (small, consistent with the module's forward)
N = 16           # number of nodes
IN_SIZE = 8      # input feature size
OUT_SIZE = 8     # GAT out_size per head
HEADS = 4        # layer_num_heads
META = 3         # num_meta_paths
HIDDEN = 32      # SemanticAttention hidden size
NEG_SLOPE = 0.2  # GATConv leaky_relu default

D = HEADS * OUT_SIZE     # 32  per-meta embedding width
MD = META * D            # 96  all-meta channel width
MN = META * N            # 48  (meta, dst) rows
R = HEADS * META * N     # 192 tall rows: (head, meta, dst)

# ---- bf16 slab (MD columns) row offsets -------------------------------------
_WF0, _WF1 = 0, IN_SIZE          # Wf rows 0:8 (block padded to 16 for bf16 tiling)
_AL0 = 16                        # ALsel rows 16:208
_AR0 = _AL0 + R                  # ARsel rows 208:400
_CH0 = _AR0 + R                  # chmask rows 400:592
_MM_ROWS = _CH0 + R              # 592

# ---- f32 slab (PF_W columns) row offsets ------------------------------------
PF_W = MN                        # 48
_SB0 = 0                         # SumBlocks (MD, D)
_BI0 = _SB0 + MD                 # 96  bias_cat (MN, D)
_W10 = _BI0 + MN                 # 144 W1 (D, HIDDEN)
_B10 = _W10 + D                  # 176 b1 (1, HIDDEN) padded to 8 rows
_W20 = _B10 + 8                  # 184 w2 (HIDDEN, 1)
_PL0 = _W20 + HIDDEN             # 216 pool (META, MN) padded to 8 rows
_PF_ROWS = _PL0 + 8              # 224


# ---------------------------------------------------------------------------
# Fused kernel: META x GATConv (+ELU) followed by SemanticAttention.
# ---------------------------------------------------------------------------
def _han_kernel(h_ref, msk_ref, mm_ref, pf_ref, out_ref):
    f32, bf16 = jnp.float32, jnp.bfloat16

    # static, tile-aligned windows into the packed slabs (row starts all % 8/16 == 0)
    wf = mm_ref[_WF0:_WF1, :]                       # (IN, MD)  bf16
    alr = mm_ref[_AL0:_CH0, :]                      # (2R, MD)  bf16: [ALsel; ARsel]
    chm = mm_ref[_CH0:_CH0 + R, :]                  # (R, MD)   bf16 0/1 channel mask
    mbias = msk_ref[0:R, :]                         # (R, N)    f32 additive adjacency mask
    donehot = msk_ref[R:2 * R, :]                   # (R, N)    f32 one-hot of dst = row % N
    sumb = pf_ref[_SB0:_SB0 + MD, 0:D]              # (MD, D)
    bias = pf_ref[_BI0:_BI0 + MN, 0:D]              # (MN, D)
    w1 = pf_ref[_W10:_W10 + D, 0:HIDDEN]            # (D, HIDDEN)
    b1 = pf_ref[_B10:_B10 + 1, 0:HIDDEN]            # (1, HIDDEN)
    w2 = pf_ref[_W20:_W20 + HIDDEN, 0:1]            # (HIDDEN, 1)
    pool = pf_ref[_PL0:_PL0 + META, 0:MN]           # (META, MN) per-meta mean

    # ---- feature projection for every meta-path in one bf16 MXU matmul ----
    feat = jnp.dot(h_ref[...].astype(bf16), wf, preferred_element_type=f32)   # (N, MD)
    feat_b = feat.astype(bf16)
    feat_t = feat.T.astype(bf16)                    # (MD, N): one tiny XLU transpose

    # ---- attention logits for every (head, meta, dst) row in one matmul ----
    both = jnp.dot(alr, feat_t, preferred_element_type=f32)       # (2R, N)
    e_src = both[0:R, :]                                          # el[m][src, h] along lanes
    er_sel = both[R:2 * R, :]                                     # er[m][node, h] along lanes
    e_dst = jnp.sum(er_sel * donehot, axis=-1, keepdims=True)     # (R, 1): er at node == dst
    e = e_src + e_dst
    e = jnp.where(e > 0.0, e, NEG_SLOPE * e)                      # leaky_relu
    e = e + mbias                                                 # additive -1e30 masking

    # ---- single softmax over src (lane axis); normalization on the EUP ----
    mmax = jnp.max(e, axis=-1, keepdims=True)
    p = jnp.exp(e - mmax)                                         # masked lanes underflow to 0
    den = jnp.sum(p, axis=-1, keepdims=True)
    pn = p * pl.reciprocal(den, approx=True)

    # ---- ONE aggregation matmul for all (meta, head); constant-mask combine ----
    z_all = jnp.dot(pn.astype(bf16), feat_b, preferred_element_type=f32)      # (R, MD)
    z2 = jnp.dot(z_all * chm, sumb, preferred_element_type=f32)               # (R, D)
    zc = z2[0:MN, :]                                # head combine: 3 aligned slice-adds
    for hd in range(1, HEADS):
        zc = zc + z2[hd * MN:(hd + 1) * MN, :]      # (MN, D) rows = (meta, dst)
    zc = zc + bias
    zc = jnp.where(zc > 0.0, zc, jnp.exp(zc) - 1.0)  # ELU

    # ---- semantic attention, batched over meta-paths ----
    proj = jnp.tanh(jnp.dot(zc, w1, preferred_element_type=f32) + b1)         # (MN, HIDDEN)
    s = jnp.dot(proj, w2, preferred_element_type=f32)                         # (MN, 1)
    wv = jnp.dot(pool, s, preferred_element_type=f32)                         # (META, 1)
    ex = jnp.exp(wv - jnp.max(wv, axis=0, keepdims=True))
    beta = ex / jnp.sum(ex, axis=0, keepdims=True)                            # (META, 1)

    out = beta[0:1, 0:1] * zc[0:N, :]
    for m in range(1, META):
        out = out + beta[m:m + 1, 0:1] * zc[m * N:(m + 1) * N, :]
    out_ref[...] = out


# ---------------------------------------------------------------------------
# Wrapper: packs all parameters into lane-aligned slabs (4 kernel inputs total)
# and calls the single fused, un-gridded kernel (everything lives in VMEM).
# ---------------------------------------------------------------------------
def han_layer(adj, h, W, attn_l, attn_r, gat_bias, W1, b1, w2):
    f32 = jnp.float32
    eyeM = jnp.eye(META, dtype=f32)
    eyeH = jnp.eye(HEADS, dtype=f32)

    # feature projection weights for all meta-paths: Wf[:, m*D + j] = W[m, :, j]
    Wf = jnp.transpose(W, (1, 0, 2)).reshape(IN_SIZE, MD)

    # block-selection matrices: row r = h*META*N + m*N + dst picks attn_{l,r}[m, h, :]
    def _sel(a):                                                   # a: (META, HEADS, OUT)
        s = (a[None, None, :, :, :]
             * eyeM[:, None, :, None, None]
             * eyeH[None, :, None, :, None])                       # (M, H, M, H, O)
        s = jnp.transpose(s, (1, 0, 2, 3, 4)).reshape(HEADS, META, MD)
        return jnp.broadcast_to(s[:, :, None, :], (HEADS, META, N, MD)).reshape(R, MD)

    ALsel = _sel(attn_l)
    ARsel = _sel(attn_r)

    # channel mask: row r keeps only its own (meta, head) OUT-wide column block
    ch = jnp.repeat(jnp.eye(META * HEADS, dtype=f32), OUT_SIZE, axis=1)       # (M*H, MD)
    ch = jnp.transpose(ch.reshape(META, HEADS, MD), (1, 0, 2))                # (H, M, MD)
    chmask = jnp.broadcast_to(ch[:, :, None, :], (HEADS, META, N, MD)).reshape(R, MD)

    # bf16 matmul/mask slab (one DMA)
    mm = jnp.concatenate(
        [jnp.pad(Wf, ((0, 16 - IN_SIZE), (0, 0))), ALsel, ARsel, chmask],
        axis=0).astype(jnp.bfloat16)                                          # (592, 96)

    # f32 misc slab (one DMA)
    def _pad(x, rows=None):
        r, c = x.shape
        rows = r if rows is None else rows
        return jnp.zeros((rows, PF_W), f32).at[:r, :c].set(x)

    SumBlocks = jnp.tile(jnp.eye(D, dtype=f32), (META, 1))                    # (MD, D)
    bias_cat = jnp.broadcast_to(gat_bias, (META, N, D)).reshape(MN, D)        # (MN, D)
    pool = jnp.repeat(eyeM, N, axis=1) / float(N)                             # (META, MN)
    pf = jnp.concatenate([_pad(SumBlocks), _pad(bias_cat), _pad(W1),
                          _pad(b1, 8), _pad(w2), _pad(pool, 8)], axis=0)      # (224, 48)

    # runtime mask slab: additive adjacency bias (tall layout) + dst one-hot
    adjT = jnp.transpose(adj, (0, 2, 1))                                      # (M, dst, src)
    mbias = jnp.where(adjT > 0, 0.0, -1e30).astype(f32)
    mbias = jnp.broadcast_to(mbias[None], (HEADS, META, N, N)).reshape(R, N)
    donehot = jnp.tile(jnp.eye(N, dtype=f32), (HEADS * META, 1))              # (R, N)
    msk = jnp.concatenate([mbias, donehot], axis=0)                           # (2R, N)

    # TODO(synk): for a batched-graphs workload, add a leading grid axis with
    # dimension_semantics=("parallel",) so v7x's second TensorCore is used.
    return pl.pallas_call(
        _han_kernel,
        out_shape=jax.ShapeDtypeStruct((N, D), f32),
    )(h, msk, mm, pf)


# ---------------------------------------------------------------------------
# Pure-JAX reference (same math, no Pallas) for a sanity check
# ---------------------------------------------------------------------------
def ref_forward(adj, h, W, attn_l, attn_r, gat_bias, W1, b1, w2):
    embs = []
    for m in range(META):
        feat = h @ W[m]                                      # (N, D)
        f3 = feat.reshape(N, HEADS, OUT_SIZE)
        el = (f3 * attn_l[m][None]).sum(-1)                  # (N, H)
        er = (f3 * attn_r[m][None]).sum(-1)                  # (N, H)
        e = el[:, None, :] + er[None, :, :]                  # (src, dst, H)
        e = jnp.where(e > 0, e, NEG_SLOPE * e)
        mask = (adj[m] > 0)[:, :, None]
        e = jnp.where(mask, e, -1e30)
        e = e - e.max(axis=0, keepdims=True)
        p = jnp.exp(e) * mask.astype(jnp.float32)
        alpha = p / p.sum(axis=0, keepdims=True)             # (src, dst, H)
        o = jnp.einsum('sdh,sho->dho', alpha, f3)            # (N, H, OUT)
        o = o.reshape(N, D) + gat_bias[m]                    # (N, D)
        o = jnp.where(o > 0, o, jnp.exp(o) - 1.0)            # ELU
        embs.append(o)
    z = jnp.stack(embs, axis=0)                              # (M, N, D)
    proj = jnp.tanh(z @ W1 + b1) @ w2                        # (M, N, 1)
    wv = proj.mean(axis=1)                                   # (M, 1)
    beta = jax.nn.softmax(wv, axis=0)                        # (M, 1)
    return (beta[:, None, :] * z).sum(0)                     # (N, D)


if __name__ == "__main__":
    key = jax.random.PRNGKey(0)
    keys = jax.random.split(key, 9)

    h = jax.random.normal(keys[0], (N, IN_SIZE), jnp.float32)
    adj_rand = (jax.random.uniform(keys[1], (META, N, N)) < 0.4).astype(jnp.float32)
    adj = jnp.clip(adj_rand + jnp.eye(N, dtype=jnp.float32)[None], 0.0, 1.0)

    # deterministic synthetic parameters (per-meta-path GATConv + semantic attn)
    W = 0.1 * jax.random.normal(keys[2], (META, IN_SIZE, D), jnp.float32)
    attn_l = 0.1 * jax.random.normal(keys[3], (META, HEADS, OUT_SIZE), jnp.float32)
    attn_r = 0.1 * jax.random.normal(keys[4], (META, HEADS, OUT_SIZE), jnp.float32)
    gat_bias = 0.1 * jax.random.normal(keys[5], (META, 1, D), jnp.float32)
    W1 = 0.1 * jax.random.normal(keys[6], (D, HIDDEN), jnp.float32)
    b1 = 0.1 * jax.random.normal(keys[7], (1, HIDDEN), jnp.float32)
    w2 = 0.1 * jax.random.normal(keys[8], (HIDDEN, 1), jnp.float32)

    out = han_layer(adj, h, W, attn_l, attn_r, gat_bias, W1, b1, w2)
    out = jax.block_until_ready(out)

    ref = ref_forward(adj, h, W, attn_l, attn_r, gat_bias, W1, b1, w2)
    assert out.shape == (N, D)
    max_err = float(jnp.max(jnp.abs(out - ref)))
    if max_err < 1e-2:
        print("KERNEL_OK")
    else:
        print("MISMATCH", max_err)
</pallas_src>

<mosaic_0001>
module attributes {stable_mosaic.version = 11 : i64} {
  func.func @_han_kernel(%arg0: memref<16x8xf32, #tpu.memory_space<vmem>>, %arg1: memref<384x16xf32, #tpu.memory_space<vmem>>, %arg2: memref<592x96xbf16, #tpu.memory_space<vmem>>, %arg3: memref<224x48xf32, #tpu.memory_space<vmem>>, %arg4: memref<16x32xf32, #tpu.memory_space<vmem>>) attributes {dimension_semantics = [], scalar_prefetch = 0 : i64, scratch_operands = 0 : i64, tpu.core_type = #tpu.core_type<tc>} {
    %c0 = arith.constant 0 : index
    %c0_0 = arith.constant 0 : index
    %0 = vector.load %arg2[%c0, %c0_0] : memref<592x96xbf16, #tpu.memory_space<vmem>>, vector<8x96xbf16>
    %c16 = arith.constant 16 : index
    %c0_1 = arith.constant 0 : index
    %1 = vector.load %arg2[%c16, %c0_1] : memref<592x96xbf16, #tpu.memory_space<vmem>>, vector<384x96xbf16>
    %c400 = arith.constant 400 : index
    %c0_2 = arith.constant 0 : index
    %2 = vector.load %arg2[%c400, %c0_2] : memref<592x96xbf16, #tpu.memory_space<vmem>>, vector<192x96xbf16>
    %c0_3 = arith.constant 0 : index
    %c0_4 = arith.constant 0 : index
    %3 = vector.load %arg1[%c0_3, %c0_4] : memref<384x16xf32, #tpu.memory_space<vmem>>, vector<192x16xf32>
    %c192 = arith.constant 192 : index
    %c0_5 = arith.constant 0 : index
    %4 = vector.load %arg1[%c192, %c0_5] : memref<384x16xf32, #tpu.memory_space<vmem>>, vector<192x16xf32>
    %c0_6 = arith.constant 0 : index
    %c0_7 = arith.constant 0 : index
    %5 = vector.load %arg3[%c0_6, %c0_7] : memref<224x48xf32, #tpu.memory_space<vmem>>, vector<96x32xf32>
    %c96 = arith.constant 96 : index
    %c0_8 = arith.constant 0 : index
    %6 = vector.load %arg3[%c96, %c0_8] : memref<224x48xf32, #tpu.memory_space<vmem>>, vector<48x32xf32>
    %c144 = arith.constant 144 : index
    %c0_9 = arith.constant 0 : index
    %7 = vector.load %arg3[%c144, %c0_9] : memref<224x48xf32, #tpu.memory_space<vmem>>, vector<32x32xf32>
    %c176 = arith.constant 176 : index
    %c0_10 = arith.constant 0 : index
    %8 = vector.load %arg3[%c176, %c0_10] : memref<224x48xf32, #tpu.memory_space<vmem>>, vector<1x32xf32>
    %c184 = arith.constant 184 : index
    %c0_11 = arith.constant 0 : index
    %9 = vector.load %arg3[%c184, %c0_11] : memref<224x48xf32, #tpu.memory_space<vmem>>, vector<32x1xf32>
    %c216 = arith.constant 216 : index
    %c0_12 = arith.constant 0 : index
    %10 = vector.load %arg3[%c216, %c0_12] : memref<224x48xf32, #tpu.memory_space<vmem>>, vector<3x48xf32>
    %c0_13 = arith.constant 0 : index
    %c0_14 = arith.constant 0 : index
    %11 = vector.load %arg0[%c0_13, %c0_14] : memref<16x8xf32, #tpu.memory_space<vmem>>, vector<16x8xf32>
    %12 = arith.truncf %11 : vector<16x8xf32> to vector<16x8xbf16>
    %cst = arith.constant dense<0.000000e+00> : vector<16x96xf32>
    %13 = tpu.matmul %12, %0, %cst {dimension_numbers = #tpu.dot_dimension_numbers<[1], [0], [0], [1], [0, 0, 1, 1], [], []>} : vector<16x8xbf16>, vector<8x96xbf16>, vector<16x96xf32> -> vector<16x96xf32>
    %14 = arith.truncf %13 : vector<16x96xf32> to vector<16x96xbf16>
    %15 = tpu.transpose %13, [1, 0] : vector<16x96xf32> -> vector<96x16xf32>
    %16 = arith.truncf %15 : vector<96x16xf32> to vector<96x16xbf16>
    %cst_15 = arith.constant dense<0.000000e+00> : vector<384x16xf32>
    %17 = tpu.matmul %1, %16, %cst_15 {dimension_numbers = #tpu.dot_dimension_numbers<[1], [0], [0], [1], [0, 0, 1, 1], [], []>} : vector<384x96xbf16>, vector<96x16xbf16>, vector<384x16xf32> -> vector<384x16xf32>
    %18 = vector.extract_strided_slice %17 {offsets = [0, 0], sizes = [192, 16], strides = [1, 1]} : vector<384x16xf32> to vector<192x16xf32>
    %19 = vector.extract_strided_slice %17 {offsets = [192, 0], sizes = [192, 16], strides = [1, 1]} : vector<384x16xf32> to vector<192x16xf32>
    %20 = arith.mulf %19, %4 : vector<192x16xf32>
    %cst_16 = arith.constant dense<0.000000e+00> : vector<192xf32>
    %21 = vector.multi_reduction <add>, %20, %cst_16 [1] : vector<192x16xf32> to vector<192xf32>
    %22 = vector.shape_cast %21 : vector<192xf32> to vector<192x1xf32>
    %23 = vector.broadcast %22 : vector<192x1xf32> to vector<192x16xf32>
    %24 = arith.addf %18, %23 : vector<192x16xf32>
    %cst_17 = arith.constant 0.000000e+00 : f32
    %25 = vector.broadcast %cst_17 : f32 to vector<192x16xf32>
    %26 = arith.cmpf ogt, %24, %25 : vector<192x16xf32>
    %cst_18 = arith.constant 2.000000e-01 : f32
    %27 = vector.broadcast %cst_18 : f32 to vector<192x16xf32>
    %28 = arith.mulf %27, %24 : vector<192x16xf32>
    %29 = arith.select %26, %24, %28 : vector<192x16xi1>, vector<192x16xf32>
    %30 = arith.addf %29, %3 : vector<192x16xf32>
    %cst_19 = arith.constant dense<0xFF800000> : vector<192xf32>
    %31 = vector.multi_reduction <maximumf>, %30, %cst_19 [1] : vector<192x16xf32> to vector<192xf32>
    %32 = vector.shape_cast %31 : vector<192xf32> to vector<192x1xf32>
    %33 = vector.broadcast %32 : vector<192x1xf32> to vector<192x16xf32>
    %34 = arith.subf %30, %33 : vector<192x16xf32>
    %35 = math.exp %34 : vector<192x16xf32>
    %cst_20 = arith.constant dense<0.000000e+00> : vector<192xf32>
    %36 = vector.multi_reduction <add>, %35, %cst_20 [1] : vector<192x16xf32> to vector<192xf32>
    %37 = vector.shape_cast %36 : vector<192xf32> to vector<192x1xf32>
    %38 = tpu.reciprocal %37 {approx = true} : vector<192x1xf32> -> vector<192x1xf32>
    %39 = vector.broadcast %38 : vector<192x1xf32> to vector<192x16xf32>
    %40 = arith.mulf %35, %39 : vector<192x16xf32>
    %41 = arith.truncf %40 : vector<192x16xf32> to vector<192x16xbf16>
    %cst_21 = arith.constant dense<0.000000e+00> : vector<192x96xf32>
    %42 = tpu.matmul %41, %14, %cst_21 {dimension_numbers = #tpu.dot_dimension_numbers<[1], [0], [0], [1], [0, 0, 1, 1], [], []>} : vector<192x16xbf16>, vector<16x96xbf16>, vector<192x96xf32> -> vector<192x96xf32>
    %43 = arith.extf %2 : vector<192x96xbf16> to vector<192x96xf32>
    %44 = arith.mulf %42, %43 : vector<192x96xf32>
    %cst_22 = arith.constant dense<0.000000e+00> : vector<192x32xf32>
    %45 = tpu.matmul %44, %5, %cst_22 {dimension_numbers = #tpu.dot_dimension_numbers<[1], [0], [0], [1], [0, 0, 1, 1], [], []>} : vector<192x96xf32>, vector<96x32xf32>, vector<192x32xf32> -> vector<192x32xf32>
    %46 = vector.extract_strided_slice %45 {offsets = [0, 0], sizes = [48, 32], strides = [1, 1]} : vector<192x32xf32> to vector<48x32xf32>
    %47 = vector.extract_strided_slice %45 {offsets = [48, 0], sizes = [48, 32], strides = [1, 1]} : vector<192x32xf32> to vector<48x32xf32>
    %48 = arith.addf %46, %47 : vector<48x32xf32>
    %49 = vector.extract_strided_slice %45 {offsets = [96, 0], sizes = [48, 32], strides = [1, 1]} : vector<192x32xf32> to vector<48x32xf32>
    %50 = arith.addf %48, %49 : vector<48x32xf32>
    %51 = vector.extract_strided_slice %45 {offsets = [144, 0], sizes = [48, 32], strides = [1, 1]} : vector<192x32xf32> to vector<48x32xf32>
    %52 = arith.addf %50, %51 : vector<48x32xf32>
    %53 = arith.addf %52, %6 : vector<48x32xf32>
    %cst_23 = arith.constant 0.000000e+00 : f32
    %54 = vector.broadcast %cst_23 : f32 to vector<48x32xf32>
    %55 = arith.cmpf ogt, %53, %54 : vector<48x32xf32>
    %56 = math.exp %53 : vector<48x32xf32>
    %cst_24 = arith.constant 1.000000e+00 : f32
    %57 = vector.broadcast %cst_24 : f32 to vector<48x32xf32>
    %58 = arith.subf %56, %57 : vector<48x32xf32>
    %59 = arith.select %55, %53, %58 : vector<48x32xi1>, vector<48x32xf32>
    %cst_25 = arith.constant dense<0.000000e+00> : vector<48x32xf32>
    %60 = tpu.matmul %59, %7, %cst_25 {dimension_numbers = #tpu.dot_dimension_numbers<[1], [0], [0], [1], [0, 0, 1, 1], [], []>} : vector<48x32xf32>, vector<32x32xf32>, vector<48x32xf32> -> vector<48x32xf32>
    %61 = vector.broadcast %8 : vector<1x32xf32> to vector<48x32xf32>
    %62 = arith.addf %60, %61 : vector<48x32xf32>
    %63 = math.tanh %62 : vector<48x32xf32>
    %cst_26 = arith.constant dense<0.000000e+00> : vector<48x1xf32>
    %64 = tpu.matmul %63, %9, %cst_26 {dimension_numbers = #tpu.dot_dimension_numbers<[1], [0], [0], [1], [0, 0, 1, 1], [], []>} : vector<48x32xf32>, vector<32x1xf32>, vector<48x1xf32> -> vector<48x1xf32>
    %cst_27 = arith.constant dense<0.000000e+00> : vector<3x1xf32>
    %65 = tpu.matmul %10, %64, %cst_27 {dimension_numbers = #tpu.dot_dimension_numbers<[1], [0], [0], [1], [0, 0, 1, 1], [], []>} : vector<3x48xf32>, vector<48x1xf32>, vector<3x1xf32> -> vector<3x1xf32>
    %cst_28 = arith.constant dense<0xFF800000> : vector<1xf32>
    %66 = vector.multi_reduction <maximumf>, %65, %cst_28 [0] : vector<3x1xf32> to vector<1xf32>
    %67 = vector.shape_cast %66 : vector<1xf32> to vector<1x1xf32>
    %68 = vector.broadcast %67 : vector<1x1xf32> to vector<3x1xf32>
    %69 = arith.subf %65, %68 : vector<3x1xf32>
    %70 = math.exp %69 : vector<3x1xf32>
    %cst_29 = arith.constant dense<0.000000e+00> : vector<1xf32>
    %71 = vector.multi_reduction <add>, %70, %cst_29 [0] : vector<3x1xf32> to vector<1xf32>
    %72 = vector.shape_cast %71 : vector<1xf32> to vector<1x1xf32>
    %73 = vector.broadcast %72 : vector<1x1xf32> to vector<3x1xf32>
    %74 = arith.divf %70, %73 : vector<3x1xf32>
    %75 = vector.extract_strided_slice %74 {offsets = [0, 0], sizes = [1, 1], strides = [1, 1]} : vector<3x1xf32> to vector<1x1xf32>
    %76 = vector.extract_strided_slice %59 {offsets = [0, 0], sizes = [16, 32], strides = [1, 1]} : vector<48x32xf32> to vector<16x32xf32>
    %77 = vector.broadcast %75 : vector<1x1xf32> to vector<16x32xf32>
    %78 = arith.mulf %77, %76 : vector<16x32xf32>
    %79 = vector.extract_strided_slice %74 {offsets = [1, 0], sizes = [1, 1], strides = [1, 1]} : vector<3x1xf32> to vector<1x1xf32>
    %80 = vector.extract_strided_slice %59 {offsets = [16, 0], sizes = [16, 32], strides = [1, 1]} : vector<48x32xf32> to vector<16x32xf32>
    %81 = vector.broadcast %79 : vector<1x1xf32> to vector<16x32xf32>
    %82 = arith.mulf %81, %80 : vector<16x32xf32>
    %83 = arith.addf %78, %82 : vector<16x32xf32>
    %84 = vector.extract_strided_slice %74 {offsets = [2, 0], sizes = [1, 1], strides = [1, 1]} : vector<3x1xf32> to vector<1x1xf32>
    %85 = vector.extract_strided_slice %59 {offsets = [32, 0], sizes = [16, 32], strides = [1, 1]} : vector<48x32xf32> to vector<16x32xf32>
    %86 = vector.broadcast %84 : vector<1x1xf32> to vector<16x32xf32>
    %87 = arith.mulf %86, %85 : vector<16x32xf32>
    %88 = arith.addf %83, %87 : vector<16x32xf32>
    %c0_30 = arith.constant 0 : index
    %c0_31 = arith.constant 0 : index
    %89 = vector.load %arg4[%c0_30, %c0_31] : memref<16x32xf32, #tpu.memory_space<vmem>>, vector<16x32xf32>
    tpu.vector_store %arg4[%c0_30, %c0_31], %88 {strides = array<i32>} : memref<16x32xf32, #tpu.memory_space<vmem>>, vector<16x32xf32>,
    return
  }
}

</mosaic_0001>

<bundles_post_ra>
// kernel: tpu_custom_call.1
= control target key start
LH: loop header
LB: loop body
LE: loop exit
PB: predicated region body
PF: predicated region fallthrough
CT: control target
= control target key end

     0   :  { %vm175_vm0 = vcmask 1043456   ;;  %v2720_v2 = vmov 0.0   ;;  %vm2721_vm1 = vmmov 0   ;;  %vm171_vm2 = vcmask 64512   ;;  %s3543_s0 = inlined_call_operand.vmem [shape: f32[16,8], index: 0, kind: input, shape index: {}]   ;;  %s3544_s1 = inlined_call_operand.vmem [shape: f32[384,16], index: 1, kind: input, shape index: {}]   ;;  %s3545_s2 = inlined_call_operand.vmem [shape: bf16[592,96], index: 2, kind: input, shape index: {}]   ;;  %s3546_s3 = inlined_call_operand.vmem [shape: f32[224,48], index: 3, kind: input, shape index: {}]   ;;  %s3547_s4 = inlined_call_operand.hbm [shape: f32[16,32], index: 4, kind: output, shape index: {}]  }
   0x1   :  { %v19_v0 = vld [vmem:[%s3545_s2] sm:$0xf]  ;;  %2338 = vmatprep.subr.bf16.mxu1 %v2720_v2  ;;  %2340 = vmatprep.mubr.msk.bf16.mxu1 %vm2721_vm1, %v2720_v2  ;;  %v169_v4 = vld [vmem:[%s3543_s0 + $0x8] sm:$0xff] }
   0x2   :  { %v168_v1 = vld [vmem:[%s3543_s0] sm:$0xff]  ;;  %v177_v3 = vsel %vm175_vm0, %v19_v0, 0 }
   0x3   :  { %2339 = vmatpush3.bf16.msra.mxu1 %v177_v3  ;;  %v170_v5 = vpack.c.bf16 %v169_v4, %v168_v1 }
   0x6   :  { %2341 = vmatmul.mubr.msk.bf16.vlgmr.msra.gmra.mxu1 %vm171_vm2, %v170_v5 }
   0x7   :  { %9 = vsyncpa [#allocation3], 0  ;;  %v2550_v11 = vld [vmem:[%s3545_s2 + $0x8] sm:$0xff]   ;;  %vm379_vm3 = vcmask 785408   ;;  %v2551_v30 = vld [vmem:[%s3545_s2 + $0x10] sm:$0xff]   ;;  %vm701_vm4 = vcmask 130048  }
   0x8   :  { %2356 = vmatprep.mubr.msk.bf16.mxu1 %vm379_vm3, %v2550_v11  ;;  %v2552_v31 = vld [vmem:[%s3545_s2 + $0x18] sm:$0xff]   ;;  %v2553_v32 = vld [vmem:[%s3545_s2 + $0x20] sm:$0xff]   ;;  %v2554_v33 = vld [vmem:[%s3545_s2 + $0x28] sm:$0xff]   ;;  %s2722_s25 = smov [#allocation2]  }
   0x9   :  { %v2555_v34 = vld [vmem:[%s3545_s2 + $0x30] sm:$0xff]   ;;  %v2556_v35 = vld [vmem:[%s3545_s2 + $0x38] sm:$0xff]   ;;  %v2557_v36 = vld [vmem:[%s3545_s2 + $0x40] sm:$0xff]   ;;  %s2054_s26 = sshll.u32 %s2722_s25, 4  ;;  %s2055_s26 = int_to_ptr.vmem [resolvable:$true] %s2054_s26 }
   0xa   :  { %v2558_v37 = vld [vmem:[%s3545_s2 + $0x48] sm:$0xff]   ;;  %v2559_v38 = vld [vmem:[%s3545_s2 + $0x50] sm:$0xff]   ;;  %v2560_v39 = vld [vmem:[%s3545_s2 + $0x58] sm:$0xff]   ;;  %s2698_s27 = scalar_lea.vmem %s2055_s26, 256  ;;  %p2703_p1 = scmp.lt.s32.totalorder %s2055_s26, %s2055_s26 }
   0xb   :  { %v2561_v40 = vld [vmem:[%s3545_s2 + $0x60] sm:$0xff]   ;;  %v2562_v41 = vld [vmem:[%s3545_s2 + $0x68] sm:$0xff]   ;;  %v2563_v42 = vld [vmem:[%s3545_s2 + $0x70] sm:$0xff]   ;;  %p2699_p0 = scmp.ne.s32.totalorder %s2055_s26, %s2698_s27  ;;  %p2704_p2 = scmp.lt.s32.totalorder %s2698_s27, %s2698_s27 }
   0xc   :  { %v2564_v43 = vld [vmem:[%s3545_s2 + $0x78] sm:$0xff]   ;;  %v2565_v44 = vld [vmem:[%s3545_s2 + $0x80] sm:$0xff]   ;;  %v2566_v45 = vld [vmem:[%s3545_s2 + $0x88] sm:$0xff]  }
   0xd   :  { %v2567_v46 = vld [vmem:[%s3545_s2 + $0x90] sm:$0xff]   ;;  %v2568_v47 = vld [vmem:[%s3545_s2 + $0x98] sm:$0xff]   ;;  %v2569_v48 = vld [vmem:[%s3545_s2 + $0xa0] sm:$0xff]   ;;  %p2705_p3 = por %p2704_p2, %p2703_p1 }
   0xe   :  { %v2570_v49 = vld [vmem:[%s3545_s2 + $0xa8] sm:$0xff]   ;;  %v2571_v50 = vld [vmem:[%s3545_s2 + $0xb0] sm:$0xff]   ;;  %v2572_v51 = vld [vmem:[%s3545_s2 + $0xb8] sm:$0xff]  }
   0xf   :  { %v2573_v52 = vld [vmem:[%s3545_s2 + $0xc0] sm:$0xff]   ;;  %p2706_p4 = pnand %p2705_p3, %p2699_p0 }
  0xc6   :  { %v213_v6 = vpop.f32.mrf.mxu1 }
  0xc7   :  { %221 = vxpose.xlu0.b32.start [1/2] (short) (narrow) %v213_v6, 96 }
  0xc8   :  { %v2342_v7 = vpop.f32.mrf.mxu1 }
  0xca   :  { %v216_v8 = vpop.f32.mrf.mxu1 }
  0xcb   :  { %222 = vxpose.xlu0.b32.end [2/2] (short) (narrow) %v216_v8, 96  ;;  %v220_v9 = vpack.c.bf16 %v216_v8, %v213_v6 }
  0xcc   :  { %v2343_v10 = vpop.f32.mrf.mxu1 }
  0xcd   :  { %2404 = vmatprep.subr.bf16.mxu0 %v220_v9 }
  0xce   :  { %2405 = vmatpush3.bf16.msra.mxu0 %v220_v9 }
 0x143   :  { %v237_v12 = vpop.trf.xlu0 }
 0x147   :  { %v238_v13 = vpop.trf.xlu0 }
 0x148   :  { %v253_v29 = vpack.c.bf16 %v238_v13, %v237_v12 }
 0x14b   :  { %v239_v14 = vpop.trf.xlu0 }
 0x14f   :  { %v240_v15 = vpop.trf.xlu0 }
 0x150   :  { %v254_v28 = vpack.c.bf16 %v240_v15, %v239_v14  ;;  %v118_v14 = vld [vmem:[%s3544_s1 + $0xd0] sm:$0xff] }
 0x153   :  { %v241_v16 = vpop.trf.xlu0 }
 0x157   :  { %v242_v17 = vpop.trf.xlu0 }
 0x158   :  { %v255_v27 = vpack.c.bf16 %v242_v17, %v241_v16  ;;  %v116_v16 = vld [vmem:[%s3544_s1 + $0xc0] sm:$0xff] }
 0x15b   :  { %v243_v18 = vpop.trf.xlu0 }
 0x15f   :  { %v244_v19 = vpop.trf.xlu0 }
 0x160   :  { %v256_v26 = vpack.c.bf16 %v244_v19, %v243_v18  ;;  %v119_v19 = vld [vmem:[%s3544_s1 + $0xd8] sm:$0xff] }
 0x163   :  { %v245_v20 = vpop.trf.xlu0 }
 0x167   :  { %v246_v21 = vpop.trf.xlu0 }
 0x168   :  { %v257_v25 = vpack.c.bf16 %v246_v21, %v245_v20 }
 0x16b   :  { %v247_v22 = vpop.trf.xlu0 }
 0x16f   :  { %v248_v23 = vpop.trf.xlu0 }
 0x170   :  { %v258_v24 = vpack.c.bf16 %v248_v23, %v247_v22 }
 0x172   :  { %2344 = vmatprep.subr.bf16.mxu1 %v258_v24 }
 0x173   :  { %2345 = vmatpush3.bf16.msra.mxu1 %v258_v24 }
 0x174   :  { %2346 = vmatprep.subr.bf16.mxu1 %v257_v25 }
 0x177   :  { %2347 = vmatpush3.bf16.msra.mxu1 %v257_v25  ;;  %v117_v25 = vld [vmem:[%s3544_s1 + $0xc8] sm:$0xff] }
 0x178   :  { %2348 = vmatprep.subr.bf16.mxu1 %v256_v26 }
 0x17b   :  { %2349 = vmatpush3.bf16.msra.mxu1 %v256_v26 }
 0x17c   :  { %2350 = vmatprep.subr.bf16.mxu1 %v255_v27 }
 0x17f   :  { %2351 = vmatpush3.bf16.msra.mxu1 %v255_v27  ;;  %v122_v27 = vld [vmem:[%s3544_s1 + $0xf0] sm:$0xff] }
 0x180   :  { %2352 = vmatprep.subr.bf16.mxu1 %v254_v28 }
 0x183   :  { %2353 = vmatpush3.bf16.msra.mxu1 %v254_v28 }
 0x184   :  { %2354 = vmatprep.subr.bf16.mxu1 %v253_v29 }
 0x187   :  { %2355 = vmatpush3.bf16.msra.mxu1 %v253_v29 }
 0x188   :  { %2524 = vmatprep.subr.mxu1 %v2720_v2 }
 0x18a   :  { %2357 = vmatmul.mubr.msk.bf16.vlgmr.msra.gmra.mxu1 %vm379_vm3, %v2551_v30 }
 0x18b   :  { %2360 = vmatprep.mubr.msk.bf16.mxu1 %vm379_vm3, %v2552_v31 }
 0x192   :  { %2361 = vmatmul.mubr.msk.bf16.gmra.mxu1 %vm379_vm3, %v2553_v32 }
 0x193   :  { %2364 = vmatprep.mubr.msk.bf16.mxu1 %vm379_vm3, %v2554_v33  ;;  %v120_v33 = vld [vmem:[%s3544_s1 + $0xe0] sm:$0xff] }
 0x19a   :  { %2365 = vmatmul.mubr.msk.bf16.gmra.mxu1 %vm379_vm3, %v2555_v34 }
 0x19b   :  { %2368 = vmatprep.mubr.msk.bf16.mxu1 %vm379_vm3, %v2556_v35 }
 0x1a2   :  { %2369 = vmatmul.mubr.msk.bf16.gmra.mxu1 %vm379_vm3, %v2557_v36 }
 0x1a3   :  { %2372 = vmatprep.mubr.msk.bf16.mxu1 %vm379_vm3, %v2558_v37  ;;  %v123_v37 = vld [vmem:[%s3544_s1 + $0xf8] sm:$0xff] }
 0x1aa   :  { %2373 = vmatmul.mubr.msk.bf16.gmra.mxu1 %vm379_vm3, %v2559_v38 }
 0x1ab   :  { %2376 = vmatprep.mubr.msk.bf16.mxu1 %vm379_vm3, %v2560_v39 }
 0x1b2   :  { %2377 = vmatmul.mubr.msk.bf16.gmra.mxu1 %vm379_vm3, %v2561_v40 }
 0x1b3   :  { %2380 = vmatprep.mubr.msk.bf16.mxu1 %vm379_vm3, %v2562_v41  ;;  %v121_v41 = vld [vmem:[%s3544_s1 + $0xe8] sm:$0xff] }
 0x1ba   :  { %2381 = vmatmul.mubr.msk.bf16.gmra.mxu1 %vm379_vm3, %v2563_v42 }
 0x1bb   :  { %2384 = vmatprep.mubr.msk.bf16.mxu1 %vm379_vm3, %v2564_v43  ;;  %v126_v43 = vld [vmem:[%s3544_s1 + $0x110] sm:$0xff] }
 0x1c2   :  { %2385 = vmatmul.mubr.msk.bf16.gmra.mxu1 %vm379_vm3, %v2565_v44 }
 0x1c3   :  { %2388 = vmatprep.mubr.msk.bf16.mxu1 %vm379_vm3, %v2566_v45 }
 0x1ca   :  { %2389 = vmatmul.mubr.msk.bf16.gmra.mxu1 %vm379_vm3, %v2567_v46 }
 0x1cb   :  { %2392 = vmatprep.mubr.msk.bf16.mxu1 %vm379_vm3, %v2568_v47 }
 0x1d2   :  { %2393 = vmatmul.mubr.msk.bf16.gmra.mxu1 %vm379_vm3, %v2569_v48 }
 0x1d3   :  { %2396 = vmatprep.mubr.msk.bf16.mxu1 %vm379_vm3, %v2570_v49  ;;  %v124_v49 = vld [vmem:[%s3544_s1 + $0x100] sm:$0xff] }
 0x1da   :  { %2397 = vmatmul.mubr.msk.bf16.gmra.mxu1 %vm379_vm3, %v2571_v50 }
 0x1db   :  { %2400 = vmatprep.mubr.msk.bf16.mxu1 %vm379_vm3, %v2572_v51 }
 0x1e2   :  { %2401 = vmatmul.mubr.msk.bf16.gmra.mxu1 %vm379_vm3, %v2573_v52 }
 0x1e3   :  { %2536 = vmatprep.mubr.msk.f32.mxu1 %vm2721_vm1, %v2720_v2 }
 0x24a   :  { %v2861_v53 = vpop.f32.mrf.mxu1 }
 0x24c   :  { %v2863_v54 = vpop.f32.mrf.mxu1 }
 0x24e   :  { %v2865_v55 = vpop.f32.mrf.mxu1 }
 0x250   :  { %v2867_v56 = vpop.f32.mrf.mxu1 }
 0x252   :  { %v2869_v57 = vpop.f32.mrf.mxu1 }
 0x254   :  { %v2871_v58 = vpop.f32.mrf.mxu1 }
 0x256   :  { %v2873_v59 = vpop.f32.mrf.mxu1 }
 0x258   :  { %v2875_v60 = vpop.f32.mrf.mxu1 }
 0x25a   :  { %v2877_v61 = vpop.f32.mrf.mxu1 }
 0x25c   :  { %v2879_v62 = vpop.f32.mrf.mxu1 }
 0x25e   :  { %v2881_v63 = vpop.f32.mrf.mxu1 }
 0x260   :  { %v2883_v0 = vpop.f32.mrf.mxu1 }
 0x262   :  { %v2885_v1 = vpop.f32.mrf.mxu1 }
 0x264   :  { %v2887_v3 = vpop.f32.mrf.mxu1 }
 0x266   :  { %v2889_v4 = vpop.f32.mrf.mxu1 }
 0x268   :  { %v2891_v5 = vpop.f32.mrf.mxu1 }
 0x26a   :  { %v2893_v6 = vpop.f32.mrf.mxu1 }
 0x26c   :  { %v2895_v7 = vpop.f32.mrf.mxu1 }
 0x26e   :  { %v2897_v8 = vpop.f32.mrf.mxu1 }
 0x270   :  { %v2899_v9 = vpop.f32.mrf.mxu1 }
 0x272   :  { %v2901_v10 = vpop.f32.mrf.mxu1 }
 0x274   :  { %v2903_v11 = vpop.f32.mrf.mxu1 }
 0x276   :  { %v2905_v12 = vpop.f32.mrf.mxu1 }
 0x278   :  { %v2907_v13 = vpop.f32.mrf.mxu1 }
 0x27a   :  { %v2382_v15 = vpop.f32.mrf.mxu1 }
 0x27b   :  { %v679_v17 = vmul.f32 %v2382_v15, %v118_v14  ;;  %v127_v14 = vld [vmem:[%s3544_s1 + $0x118] sm:$0xff] }
 0x27c   :  { %v582_v18 = vpop.f32.mrf.mxu1 }
 0x27d   :  { %v677_v20 = vmul.f32 %v582_v18, %v116_v16  ;;  %v708_v21 = vsel %vm701_vm4, %v679_v17, 0.0  ;;  %v125_v18 = vld [vmem:[%s3544_s1 + $0x108] sm:$0xff] }
 0x27e   :  { %709 = vadd.xlane.f32.xlu0 %v708_v21  ;;  %v2383_v22 = vpop.f32.mrf.mxu1 }
 0x27f   :  { %v680_v23 = vmul.f32 %v2383_v22, %v119_v19  ;;  %v702_v24 = vsel %vm701_vm4, %v677_v20, 0.0  ;;  %v130_v20 = vld [vmem:[%s3544_s1 + $0x130] sm:$0xff] }
 0x280   :  { %703 = vadd.xlane.f32.xlu1 %v702_v24  ;;  %v585_v26 = vpop.f32.mrf.mxu1 }
 0x281   :  { %v678_v28 = vmul.f32 %v585_v26, %v117_v25  ;;  %v711_v29 = vsel %vm701_vm4, %v680_v23, 0.0  ;;  %v128_v26 = vld [vmem:[%s3544_s1 + $0x120] sm:$0xff] }
 0x282   :  { %v2386_v30 = vpop.f32.mrf.mxu1 }
 0x283   :  { %v683_v31 = vmul.f32 %v2386_v30, %v122_v27  ;;  %v705_v32 = vsel %vm701_vm4, %v678_v28, 0.0  ;;  %v131_v30 = vld [vmem:[%s3544_s1 + $0x138] sm:$0xff] }
 0x284   :  { %712 = vadd.xlane.f32.xlu1 %v711_v29  ;;  %v598_v34 = vpop.f32.mrf.mxu1 }
 0x285   :  { %v720_v35 = vsel %vm701_vm4, %v683_v31, 0.0  ;;  %v681_v36 = vmul.f32 %v598_v34, %v120_v33  ;;  %v129_v34 = vld [vmem:[%s3544_s1 + $0x128] sm:$0xff] }
 0x286   :  { %v2387_v38 = vpop.f32.mrf.mxu1 }
 0x287   :  { %v684_v39 = vmul.f32 %v2387_v38, %v123_v37  ;;  %v714_v40 = vsel %vm701_vm4, %v681_v36, 0.0  ;;  %v134_v36 = vld [vmem:[%s3544_s1 + $0x150] sm:$0xff] }
 0x288   :  { %706 = vadd.xlane.f32.xlu1 %v705_v32  ;;  %v601_v42 = vpop.f32.mrf.mxu1 }
 0x289   :  { %v682_v44 = vmul.f32 %v601_v42, %v121_v41  ;;  %v723_v45 = vsel %vm701_vm4, %v684_v39, 0.0 }
 0x28a   :  { %v2390_v46 = vpop.f32.mrf.mxu1 }
 0x28b   :  { %v687_v47 = vmul.f32 %v2390_v46, %v126_v43  ;;  %v717_v48 = vsel %vm701_vm4, %v682_v44, 0.0  ;;  %v132_v43 = vld [vmem:[%s3544_s1 + $0x140] sm:$0xff] }
 0x28c   :  { %721 = vadd.xlane.f32.xlu1 %v720_v35  ;;  %v614_v50 = vpop.f32.mrf.mxu1 }
 0x28d   :  { %v732_v51 = vsel %vm701_vm4, %v687_v47, 0.0  ;;  %v685_v52 = vmul.f32 %v614_v50, %v124_v49  ;;  %v135_v47 = vld [vmem:[%s3544_s1 + $0x158] sm:$0xff] }
 0x28e   :  { %v2391_v15 = vpop.f32.mrf.mxu1 }
 0x28f   :  { %v688_v16 = vmul.f32 %v2391_v15, %v127_v14  ;;  %v726_v17 = vsel %vm701_vm4, %v685_v52, 0.0  ;;  %v138_v14 = vld [vmem:[%s3544_s1 + $0x170] sm:$0xff] }
 0x290   :  { %715 = vadd.xlane.f32.xlu1 %v714_v40  ;;  %v617_v19 = vpop.f32.mrf.mxu1 }
 0x291   :  { %v686_v21 = vmul.f32 %v617_v19, %v125_v18  ;;  %v735_v22 = vsel %vm701_vm4, %v688_v16, 0.0 }
 0x292   :  { %v2394_v23 = vpop.f32.mrf.mxu1 }
 0x293   :  { %v691_v24 = vmul.f32 %v2394_v23, %v130_v20  ;;  %v729_v25 = vsel %vm701_vm4, %v686_v21, 0.0  ;;  %v136_v20 = vld [vmem:[%s3544_s1 + $0x160] sm:$0xff] }
 0x294   :  { %724 = vadd.xlane.f32.xlu1 %v723_v45  ;;  %v630_v27 = vpop.f32.mrf.mxu1 }
 0x295   :  { %v744_v28 = vsel %vm701_vm4, %v691_v24, 0.0  ;;  %v689_v29 = vmul.f32 %v630_v27, %v128_v26  ;;  %v137_v24 = vld [vmem:[%s3544_s1 + $0x168] sm:$0xff] }
 0x296   :  { %v2395_v31 = vpop.f32.mrf.mxu1 }
 0x297   :  { %v692_v32 = vmul.f32 %v2395_v31, %v131_v30  ;;  %v738_v33 = vsel %vm701_vm4, %v689_v29, 0.0 }
 0x298   :  { %718 = vadd.xlane.f32.xlu1 %v717_v48  ;;  %v633_v35 = vpop.f32.mrf.mxu1 }
 0x299   :  { %v690_v38 = vmul.f32 %v633_v35, %v129_v34  ;;  %v747_v39 = vsel %vm701_vm4, %v692_v32, 0.0 }
 0x29a   :  { %v2398_v37 = vpop.f32.mrf.mxu1 }
 0x29b   :  { %v695_v40 = vmul.f32 %v2398_v37, %v134_v36  ;;  %v741_v42 = vsel %vm701_vm4, %v690_v38, 0.0  ;;  %v92_v38 = vld [vmem:[%s3544_s1] sm:$0xff] }
 0x29c   :  { %733 = vadd.xlane.f32.xlu1 %v732_v51  ;;  %v646_v41 = vpop.f32.mrf.mxu1  ;;  %v133_v51 = vld [vmem:[%s3544_s1 + $0x148] sm:$0xff] }
 0x29d   :  { %v756_v44 = vsel %vm701_vm4, %v695_v40, 0.0  ;;  %v693_v46 = vmul.f32 %v646_v41, %v132_v43 }
 0x29e   :  { %v2399_v45 = vpop.f32.mrf.mxu1 }
 0x29f   :  { %v696_v49 = vmul.f32 %v2399_v45, %v135_v47  ;;  %v750_v50 = vsel %vm701_vm4, %v693_v46, 0.0 }
 0x2a0   :  { %727 = vadd.xlane.f32.xlu1 %v726_v17  ;;  %v649_v48 = vpop.f32.mrf.mxu1 }
 0x2a1   :  { %v694_v15 = vmul.f32 %v649_v48, %v133_v51  ;;  %v759_v16 = vsel %vm701_vm4, %v696_v49, 0.0  ;;  %v93_v48 = vld [vmem:[%s3544_s1 + $0x8] sm:$0xff] }
 0x2a2   :  { %v2402_v52 = vpop.f32.mrf.mxu1 }
 0x2a3   :  { %v699_v18 = vmul.f32 %v2402_v52, %v138_v14  ;;  %v753_v19 = vsel %vm701_vm4, %v694_v15, 0.0 }
 0x2a4   :  { %736 = vadd.xlane.f32.xlu1 %v735_v22  ;;  %v662_v17 = vpop.f32.mrf.mxu1 }
 0x2a5   :  { %v768_v22 = vsel %vm701_vm4, %v699_v18, 0.0  ;;  %v697_v23 = vmul.f32 %v662_v17, %v136_v20 }
 0x2a6   :  { %v2403_v21 = vpop.f32.mrf.mxu1 }
 0x2a7   :  { %v762_v27 = vsel %vm701_vm4, %v697_v23, 0.0 }
 0x2a8   :  { %730 = vadd.xlane.f32.xlu1 %v729_v25  ;;  %v665_v25 = vpop.f32.mrf.mxu1 }
 0x2a9   :  { %v698_v26 = vmul.f32 %v665_v25, %v137_v24 }
 0x2ab   :  { %v765_v30 = vsel %vm701_vm4, %v698_v26, 0.0 }
 0x2ac   :  { %745 = vadd.xlane.f32.xlu1 %v744_v28  ;;  %v139_v28 = vld [vmem:[%s3544_s1 + $0x178] sm:$0xff] }
 0x2ad   :  { %v700_v29 = vmul.f32 %v2403_v21, %v139_v28  ;;  %v96_v21 = vld [vmem:[%s3544_s1 + $0x20] sm:$0xff] }
 0x2af   :  { %v771_v31 = vsel %vm701_vm4, %v700_v29, 0.0 }
 0x2b0   :  { %739 = vadd.xlane.f32.xlu1 %v738_v33 }
 0x2b4   :  { %748 = vadd.xlane.f32.xlu1 %v747_v39 }
 0x2b8   :  { %742 = vadd.xlane.f32.xlu1 %v741_v42  ;;  %v94_v42 = vld [vmem:[%s3544_s1 + $0x10] sm:$0xff] }
 0x2bc   :  { %757 = vadd.xlane.f32.xlu1 %v756_v44 }
 0x2c0   :  { %751 = vadd.xlane.f32.xlu1 %v750_v50 }
 0x2c4   :  { %760 = vadd.xlane.f32.xlu1 %v759_v16 }
 0x2c8   :  { %754 = vadd.xlane.f32.xlu1 %v753_v19 }
 0x2cc   :  { %769 = vadd.xlane.f32.xlu1 %v768_v22 }
 0x2d0   :  { %763 = vadd.xlane.f32.xlu1 %v762_v27 }
 0x2d4   :  { %766 = vadd.xlane.f32.xlu1 %v765_v30 }
 0x2d8   :  { %772 = vadd.xlane.f32.xlu1 %v771_v31 }
 0x307   :  { %v710_v32 = vpop.xlane.xlu0 %709 }
 0x308   :  { %v776_v33 = vadd.f32 %v2861_v53, %v710_v32 }
 0x309   :  { %v704_v34 = vpop.xlane.xlu1 %703 }
 0x30a   :  { %v824_v35 = vmul.f32 0.2, %v776_v33  ;;  %v774_v36 = vadd.f32 %v704_v34, %v2863_v54  ;;  %vm800_vm5 = vcmp.gt.f32.partialorder %v776_v33, 0.0 }
 0x30c   :  { %vm798_vm6 = vcmp.gt.f32.partialorder %v774_v36, 0.0  ;;  %v822_v37 = vmul.f32 0.2, %v774_v36  ;;  %v848_v53 = vsel %vm800_vm5, %v776_v33, %v824_v35  ;;  %v97_v33 = vld [vmem:[%s3544_s1 + $0x28] sm:$0xff] }
 0x30d   :  { %v713_v39 = vpop.xlane.xlu1 %712  ;;  %v3018_v45 = vadd.f32 %v848_v53, %v94_v42 }
 0x30e   :  { %v777_v40 = vadd.f32 %v2865_v55, %v713_v39  ;;  %v846_v41 = vsel %vm798_vm6, %v774_v36, %v822_v37 }
 0x30f   :  { %v3014_v43 = vadd.f32 %v846_v41, %v92_v38  ;;  %v900_v50 = vsel %vm701_vm4, %v3018_v45, -inf }
 0x310   :  { %v825_v46 = vmul.f32 0.2, %v777_v40  ;;  %vm801_vm7 = vcmp.gt.f32.partialorder %v777_v40, 0.0 }
 0x311   :  { %v707_v44 = vpop.xlane.xlu1 %706  ;;  %v894_v54 = vsel %vm701_vm4, %v3014_v43, -inf }
 0x312   :  { %v775_v47 = vadd.f32 %v707_v44, %v2867_v56  ;;  %895 = vmax.xlane.f32.xlu1 %v894_v54  ;;  %v95_v56 = vld [vmem:[%s3544_s1 + $0x18] sm:$0xff]  ;;  %v849_v14 = vsel %vm801_vm7, %v777_v40, %v825_v46  ;;  %v100_v54 = vld [vmem:[%s3544_s1 + $0x40] sm:$0xff] }
 0x313   :  { %v3034_v18 = vadd.f32 %v849_v14, %v95_v56 }
 0x314   :  { %vm799_vm8 = vcmp.gt.f32.partialorder %v775_v47, 0.0  ;;  %v823_v55 = vmul.f32 0.2, %v775_v47 }
 0x315   :  { %v722_v49 = vpop.xlane.xlu1 %721  ;;  %v903_v23 = vsel %vm701_vm4, %v3034_v18, -inf }
 0x316   :  { %v780_v51 = vadd.f32 %v2869_v57, %v722_v49  ;;  %901 = vmax.xlane.f32.xlu1 %v900_v50  ;;  %v847_v52 = vsel %vm799_vm8, %v775_v47, %v823_v55 }
 0x317   :  { %v3030_v15 = vadd.f32 %v847_v52, %v93_v48 }
 0x318   :  { %v828_v19 = vmul.f32 0.2, %v780_v51  ;;  %vm804_vm9 = vcmp.gt.f32.partialorder %v780_v51, 0.0 }
 0x319   :  { %v716_v16 = vpop.xlane.xlu1 %715  ;;  %v897_v17 = vsel %vm701_vm4, %v3030_v15, -inf }
 0x31a   :  { %v778_v20 = vadd.f32 %v716_v16, %v2871_v58  ;;  %898 = vmax.xlane.f32.xlu0 %v897_v17  ;;  %v98_v58 = vld [vmem:[%s3544_s1 + $0x30] sm:$0xff]  ;;  %v852_v26 = vsel %vm804_vm9, %v780_v51, %v828_v19  ;;  %v101_v17 = vld [vmem:[%s3544_s1 + $0x48] sm:$0xff] }
 0x31b   :  { %v3050_v30 = vadd.f32 %v852_v26, %v98_v58 }
 0x31c   :  { %vm802_vm10 = vcmp.gt.f32.partialorder %v778_v20, 0.0  ;;  %v826_v57 = vmul.f32 0.2, %v778_v20 }
 0x31d   :  { %v725_v22 = vpop.xlane.xlu1 %724  ;;  %v912_v35 = vsel %vm701_vm4, %v3050_v30, -inf }
 0x31e   :  { %v781_v24 = vadd.f32 %v2873_v59, %v725_v22  ;;  %904 = vmax.xlane.f32.xlu0 %v903_v23  ;;  %v850_v25 = vsel %vm802_vm10, %v778_v20, %v826_v57 }
 0x31f   :  { %v3046_v27 = vadd.f32 %v850_v25, %v96_v21 }
 0x320   :  { %v829_v31 = vmul.f32 0.2, %v781_v24  ;;  %vm805_vm11 = vcmp.gt.f32.partialorder %v781_v24, 0.0 }
 0x321   :  { %v719_v28 = vpop.xlane.xlu1 %718  ;;  %v906_v29 = vsel %vm701_vm4, %v3046_v27, -inf }
 0x322   :  { %v779_v32 = vadd.f32 %v719_v28, %v2875_v60  ;;  %907 = vmax.xlane.f32.xlu1 %v906_v29  ;;  %v99_v60 = vld [vmem:[%s3544_s1 + $0x38] sm:$0xff]  ;;  %v853_v38 = vsel %vm805_vm11, %v781_v24, %v829_v31  ;;  %v104_v29 = vld [vmem:[%s3544_s1 + $0x60] sm:$0xff] }
 0x323   :  { %v3066_v42 = vadd.f32 %v853_v38, %v99_v60 }
 0x324   :  { %vm803_vm12 = vcmp.gt.f32.partialorder %v779_v32, 0.0  ;;  %v827_v59 = vmul.f32 0.2, %v779_v32 }
 0x325   :  { %v734_v34 = vpop.xlane.xlu1 %733  ;;  %v915_v47 = vsel %vm701_vm4, %v3066_v42, -inf }
 0x326   :  { %v784_v36 = vadd.f32 %v2877_v61, %v734_v34  ;;  %913 = vmax.xlane.f32.xlu1 %v912_v35  ;;  %v851_v37 = vsel %vm803_vm12, %v779_v32, %v827_v59 }
 0x327   :  { %v3062_v39 = vadd.f32 %v851_v37, %v97_v33 }
 0x328   :  { %v832_v53 = vmul.f32 0.2, %v784_v36  ;;  %vm808_vm13 = vcmp.gt.f32.partialorder %v784_v36, 0.0 }
 0x329   :  { %v728_v40 = vpop.xlane.xlu1 %727  ;;  %v909_v41 = vsel %vm701_vm4, %v3062_v39, -inf }
 0x32a   :  { %v782_v44 = vadd.f32 %v728_v40, %v2879_v62  ;;  %910 = vmax.xlane.f32.xlu0 %v909_v41  ;;  %v102_v62 = vld [vmem:[%s3544_s1 + $0x50] sm:$0xff]  ;;  %v856_v49 = vsel %vm808_vm13, %v784_v36, %v832_v53  ;;  %v105_v41 = vld [vmem:[%s3544_s1 + $0x68] sm:$0xff] }
 0x32b   :  { %v3082_v56 = vadd.f32 %v856_v49, %v102_v62 }
 0x32c   :  { %vm806_vm14 = vcmp.gt.f32.partialorder %v782_v44, 0.0  ;;  %v830_v61 = vmul.f32 0.2, %v782_v44 }
 0x32d   :  { %v737_v46 = vpop.xlane.xlu1 %736  ;;  %v924_v20 = vsel %vm701_vm4, %v3082_v56, -inf }
 0x32e   :  { %v785_v55 = vadd.f32 %v2881_v63, %v737_v46  ;;  %916 = vmax.xlane.f32.xlu0 %v915_v47  ;;  %v854_v48 = vsel %vm806_vm14, %v782_v44, %v830_v61 }
 0x32f   :  { %v3078_v50 = vadd.f32 %v854_v48, %v100_v54 }
 0x330   :  { %v833_v14 = vmul.f32 0.2, %v785_v55  ;;  %vm809_vm15 = vcmp.gt.f32.partialorder %v785_v55, 0.0 }
 0x331   :  { %v731_v51 = vpop.xlane.xlu1 %730  ;;  %v918_v52 = vsel %vm701_vm4, %v3078_v50, -inf }
 0x332   :  { %v783_v16 = vadd.f32 %v731_v51, %v2883_v0  ;;  %919 = vmax.xlane.f32.xlu1 %v918_v52  ;;  %v103_v0 = vld [vmem:[%s3544_s1 + $0x58] sm:$0xff]  ;;  %v857_v22 = vsel %vm809_vm15, %v785_v55, %v833_v14  ;;  %v108_v52 = vld [vmem:[%s3544_s1 + $0x80] sm:$0xff] }
 0x333   :  { %v3098_v58 = vadd.f32 %v857_v22, %v103_v0 }
 0x334   :  { %vm807_vm0 = vcmp.gt.f32.partialorder %v783_v16, 0.0  ;;  %v831_v63 = vmul.f32 0.2, %v783_v16 }
 0x335   :  { %v746_v19 = vpop.xlane.xlu1 %745  ;;  %v927_v32 = vsel %vm701_vm4, %v3098_v58, -inf }
 0x336   :  { %v788_v57 = vadd.f32 %v2885_v1, %v746_v19  ;;  %925 = vmax.xlane.f32.xlu1 %v924_v20  ;;  %v855_v21 = vsel %vm807_vm0, %v783_v16, %v831_v63 }
 0x337   :  { %v3094_v23 = vadd.f32 %v855_v21, %v101_v17 }
 0x338   :  { %v836_v26 = vmul.f32 0.2, %v788_v57  ;;  %vm812_vm1 = vcmp.gt.f32.partialorder %v788_v57, 0.0 }
 0x339   :  { %v740_v24 = vpop.xlane.xlu1 %739  ;;  %v921_v25 = vsel %vm701_vm4, %v3094_v23, -inf }
 0x33a   :  { %v786_v28 = vadd.f32 %v740_v24, %v2887_v3  ;;  %922 = vmax.xlane.f32.xlu0 %v921_v25  ;;  %v106_v3 = vld [vmem:[%s3544_s1 + $0x70] sm:$0xff]  ;;  %v860_v34 = vsel %vm812_vm1, %v788_v57, %v836_v26  ;;  %v109_v25 = vld [vmem:[%s3544_s1 + $0x88] sm:$0xff] }
 0x33b   :  { %v3114_v60 = vadd.f32 %v860_v34, %v106_v3 }
 0x33c   :  { %vm810_vm2 = vcmp.gt.f32.partialorder %v786_v28, 0.0  ;;  %v834_v1 = vmul.f32 0.2, %v786_v28 }
 0x33d   :  { %v749_v31 = vpop.xlane.xlu1 %748  ;;  %v936_v44 = vsel %vm701_vm4, %v3114_v60, -inf }
 0x33e   :  { %v789_v59 = vadd.f32 %v2889_v4, %v749_v31  ;;  %928 = vmax.xlane.f32.xlu0 %v927_v32  ;;  %v858_v33 = vsel %vm810_vm2, %v786_v28, %v834_v1 }
 0x33f   :  { %v3110_v35 = vadd.f32 %v858_v33, %v104_v29 }
 0x340   :  { %v837_v38 = vmul.f32 0.2, %v789_v59  ;;  %vm813_vm5 = vcmp.gt.f32.partialorder %v789_v59, 0.0 }
 0x341   :  { %v743_v36 = vpop.xlane.xlu1 %742  ;;  %v930_v37 = vsel %vm701_vm4, %v3110_v35, -inf }
 0x342   :  { %v787_v40 = vadd.f32 %v743_v36, %v2891_v5  ;;  %931 = vmax.xlane.f32.xlu1 %v930_v37  ;;  %v107_v5 = vld [vmem:[%s3544_s1 + $0x78] sm:$0xff]  ;;  %v861_v46 = vsel %vm813_vm5, %v789_v59, %v837_v38  ;;  %v112_v37 = vld [vmem:[%s3544_s1 + $0xa0] sm:$0xff] }
 0x343   :  { %v3130_v62 = vadd.f32 %v861_v46, %v107_v5 }
 0x344   :  { %vm811_vm6 = vcmp.gt.f32.partialorder %v787_v40, 0.0  ;;  %v835_v4 = vmul.f32 0.2, %v787_v40 }
 0x345   :  { %v758_v53 = vpop.xlane.xlu1 %757  ;;  %v939_v16 = vsel %vm701_vm4, %v3130_v62, -inf }
 0x346   :  { %v792_v61 = vadd.f32 %v2893_v6, %v758_v53  ;;  %937 = vmax.xlane.f32.xlu1 %v936_v44  ;;  %v859_v54 = vsel %vm811_vm6, %v787_v40, %v835_v4  ;;  %vm1931_vm6 = vcmask 392192  }
 0x347   :  { %v3126_v47 = vadd.f32 %v859_v54, %v105_v41  ;;  %v113_v54 = vld [vmem:[%s3544_s1 + $0xa8] sm:$0xff] }
 0x348   :  { %v840_v49 = vmul.f32 0.2, %v792_v61  ;;  %vm816_vm7 = vcmp.gt.f32.partialorder %v792_v61, 0.0 }
 0x349   :  { %v752_v55 = vpop.xlane.xlu1 %751  ;;  %v933_v48 = vsel %vm701_vm4, %v3126_v47, -inf }
 0x34a   :  { %v790_v51 = vadd.f32 %v752_v55, %v2895_v7  ;;  %934 = vmax.xlane.f32.xlu0 %v933_v48  ;;  %v110_v7 = vld [vmem:[%s3544_s1 + $0x90] sm:$0xff]  ;;  %v864_v19 = vsel %vm816_vm7, %v792_v61, %v840_v49  ;;  %vm2005_vm7 = vcmask 2048  }
 0x34b   :  { %v3146_v0 = vadd.f32 %v864_v19, %v110_v7 }
 0x34c   :  { %vm814_vm8 = vcmp.gt.f32.partialorder %v790_v51, 0.0  ;;  %v838_v6 = vmul.f32 0.2, %v790_v51 }
 0x34d   :  { %v761_v14 = vpop.xlane.xlu1 %760  ;;  %v948_v28 = vsel %vm701_vm4, %v3146_v0, -inf }
 0x34e   :  { %v793_v63 = vadd.f32 %v2897_v8, %v761_v14  ;;  %940 = vmax.xlane.f32.xlu0 %v939_v16  ;;  %v862_v17 = vsel %vm814_vm8, %v790_v51, %v838_v6  ;;  %v115_v6 = vld [vmem:[%s3544_s1 + $0xb8] sm:$0xff] }
 0x34f   :  { %v3142_v20 = vadd.f32 %v862_v17, %v108_v52 }
 0x350   :  { %v841_v22 = vmul.f32 0.2, %v793_v63  ;;  %vm817_vm9 = vcmp.gt.f32.partialorder %v793_v63, 0.0 }
 0x351   :  { %v755_v57 = vpop.xlane.xlu1 %754  ;;  %v942_v21 = vsel %vm701_vm4, %v3142_v20, -inf }
 0x352   :  { %v791_v24 = vadd.f32 %v755_v57, %v2899_v9  ;;  %943 = vmax.xlane.f32.xlu1 %v942_v21  ;;  %v111_v9 = vld [vmem:[%s3544_s1 + $0x98] sm:$0xff]  ;;  %v865_v31 = vsel %vm817_vm9, %v793_v63, %v841_v22 }
 0x353   :  { %v3162_v3 = vadd.f32 %v865_v31, %v111_v9 }
 0x354   :  { %vm815_vm10 = vcmp.gt.f32.partialorder %v791_v24, 0.0  ;;  %v839_v8 = vmul.f32 0.2, %v791_v24 }
 0x355   :  { %v770_v26 = vpop.xlane.xlu1 %769  ;;  %v951_v40 = vsel %vm701_vm4, %v3162_v3, -inf }
 0x356   :  { %v796_v1 = vadd.f32 %v2901_v10, %v770_v26  ;;  %949 = vmax.xlane.f32.xlu1 %v948_v28  ;;  %v863_v29 = vsel %vm815_vm10, %v791_v24, %v839_v8 }
 0x357   :  { %v3158_v32 = vadd.f32 %v863_v29, %v109_v25 }
 0x358   :  { %v844_v34 = vmul.f32 0.2, %v796_v1  ;;  %vm820_vm11 = vcmp.gt.f32.partialorder %v796_v1, 0.0 }
 0x359   :  { %v764_v59 = vpop.xlane.xlu1 %763  ;;  %v945_v33 = vsel %vm701_vm4, %v3158_v32, -inf }
 0x35a   :  { %v794_v36 = vadd.f32 %v764_v59, %v2903_v11  ;;  %946 = vmax.xlane.f32.xlu0 %v945_v33  ;;  %v114_v11 = vld [vmem:[%s3544_s1 + $0xb0] sm:$0xff]  ;;  %v868_v53 = vsel %vm820_vm11, %v796_v1, %v844_v34 }
 0x35c   :  { %vm818_vm12 = vcmp.gt.f32.partialorder %v794_v36, 0.0  ;;  %v842_v10 = vmul.f32 0.2, %v794_v36 }
 0x35d   :  { %v767_v38 = vpop.xlane.xlu1 %766 }
 0x35e   :  { %v795_v4 = vadd.f32 %v767_v38, %v2907_v13  ;;  %952 = vmax.xlane.f32.xlu0 %v951_v40  ;;  %v866_v41 = vsel %vm818_vm12, %v794_v36, %v842_v10  ;;  %v3181_v13 = vadd.f32 %v868_v53, %v114_v11 }
 0x35f   :  { %v3174_v44 = vadd.f32 %v866_v41, %v112_v37 }
 0x360   :  { %vm819_vm13 = vcmp.gt.f32.partialorder %v795_v4, 0.0  ;;  %v843_v61 = vmul.f32 0.2, %v795_v4  ;;  %v960_v52 = vsel %vm701_vm4, %v3181_v13, -inf }
 0x361   :  { %v773_v5 = vpop.xlane.xlu1 %772  ;;  %v954_v46 = vsel %vm701_vm4, %v3174_v44, -inf }
 0x362   :  { %v797_v55 = vadd.f32 %v2905_v12, %v773_v5  ;;  %955 = vmax.xlane.f32.xlu1 %v954_v46  ;;  %v867_v48 = vsel %vm819_vm13, %v795_v4, %v843_v61 }
 0x363   :  { %v3184_v49 = vadd.f32 %v867_v48, %v113_v54 }
 0x364   :  { %vm821_vm14 = vcmp.gt.f32.partialorder %v797_v55, 0.0  ;;  %v845_v51 = vmul.f32 0.2, %v797_v55 }
 0x365   :  { %v957_v14 = vsel %vm701_vm4, %v3184_v49, -inf }
 0x366   :  { %961 = vmax.xlane.f32.xlu1 %v960_v52  ;;  %958 = vmax.xlane.f32.xlu0 %v957_v14  ;;  %v869_v16 = vsel %vm821_vm14, %v797_v55, %v845_v51 }
 0x367   :  { %v3193_v12 = vadd.f32 %v869_v16, %v115_v6 }
 0x369   :  { %v963_v63 = vsel %vm701_vm4, %v3193_v12, -inf }
 0x36a   :  { %964 = vmax.xlane.f32.xlu0 %v963_v63 }
 0x39b   :  { %v896_v17 = vpop.xlane.xlu1 %895 }
 0x39c   :  { %v966_v7 = vsub.f32 %v3014_v43, %v896_v17 }
 0x39e   :  { %v990_v19 = vmul.f32 1.442695, %v966_v7 }
 0x39f   :  { %v902_v57 = vpop.xlane.xlu1 %901 }
 0x3a0   :  { %2574 = vpow2.f32 %v990_v19  ;;  %v968_v21 = vsub.f32 %v3018_v45, %v902_v57 }
 0x3a2   :  { %v994_v22 = vmul.f32 1.442695, %v968_v21 }
 0x3a3   :  { %v899_v24 = vpop.xlane.xlu0 %898 }
 0x3a4   :  { %2576 = vpow2.f32 %v994_v22  ;;  %v967_v8 = vsub.f32 %v3030_v15, %v899_v24 }
 0x3a6   :  { %v992_v25 = vmul.f32 1.442695, %v967_v8 }
 0x3a7   :  { %v905_v26 = vpop.xlane.xlu0 %904 }
 0x3a8   :  { %2578 = vpow2.f32 %v992_v25  ;;  %v969_v28 = vsub.f32 %v3034_v18, %v905_v26 }
 0x3aa   :  { %v996_v1 = vmul.f32 1.442695, %v969_v28 }
 0x3ab   :  { %v908_v29 = vpop.xlane.xlu1 %907 }
 0x3ac   :  { %2580 = vpow2.f32 %v996_v1  ;;  %v970_v43 = vsub.f32 %v3046_v27, %v908_v29 }
 0x3ad   :  { %v3202_v9 = vpop.eup %2574 }
 0x3ae   :  { %v998_v31 = vmul.f32 1.442695, %v970_v43  ;;  %v1038_v45 = vsel %vm701_vm4, %v3202_v9, 0.0 }
 0x3af   :  { %1039 = vadd.xlane.f32.xlu1 %v1038_v45  ;;  %v914_v59 = vpop.xlane.xlu1 %913 }
 0x3b0   :  { %2582 = vpow2.f32 %v998_v31  ;;  %v972_v15 = vsub.f32 %v3050_v30, %v914_v59 }
 0x3b1   :  { %v3207_v33 = vpop.eup %2576 }
 0x3b2   :  { %v1002_v34 = vmul.f32 1.442695, %v972_v15  ;;  %v1044_v18 = vsel %vm701_vm4, %v3207_v33, 0.0 }
 0x3b3   :  { %v911_v36 = vpop.xlane.xlu0 %910  ;;  %1045 = vadd.xlane.f32.xlu1 %v1044_v18 }
 0x3b4   :  { %2584 = vpow2.f32 %v1002_v34  ;;  %v971_v27 = vsub.f32 %v3062_v39, %v911_v36 }
 0x3b5   :  { %v3212_v10 = vpop.eup %2578 }
 0x3b6   :  { %v1000_v37 = vmul.f32 1.442695, %v971_v27  ;;  %v1041_v38 = vsel %vm701_vm4, %v3212_v10, 0.0 }
 0x3b7   :  { %v917_v40 = vpop.xlane.xlu0 %916  ;;  %1042 = vadd.xlane.f32.xlu0 %v1041_v38 }
 0x3b8   :  { %2586 = vpow2.f32 %v1000_v37  ;;  %v973_v30 = vsub.f32 %v3066_v42, %v917_v40 }
 0x3b9   :  { %v3217_v4 = vpop.eup %2580 }
 0x3ba   :  { %v1004_v41 = vmul.f32 1.442695, %v973_v30  ;;  %v1047_v11 = vsel %vm701_vm4, %v3217_v4, 0.0 }
 0x3bb   :  { %1048 = vadd.xlane.f32.xlu0 %v1047_v11  ;;  %v920_v53 = vpop.xlane.xlu1 %919 }
 0x3bc   :  { %2588 = vpow2.f32 %v1004_v41  ;;  %v974_v39 = vsub.f32 %v3078_v50, %v920_v53 }
 0x3bd   :  { %v3222_v61 = vpop.eup %2582 }
 0x3be   :  { %v1006_v54 = vmul.f32 1.442695, %v974_v39  ;;  %v1050_v5 = vsel %vm701_vm4, %v3222_v61, 0.0 }
 0x3bf   :  { %1051 = vadd.xlane.f32.xlu1 %v1050_v5  ;;  %v926_v46 = vpop.xlane.xlu1 %925 }
 0x3c0   :  { %2590 = vpow2.f32 %v1006_v54  ;;  %v976_v42 = vsub.f32 %v3082_v56, %v926_v46 }
 0x3c1   :  { %v3227_v55 = vpop.eup %2584 }
 0x3c2   :  { %v1010_v48 = vmul.f32 1.442695, %v976_v42  ;;  %v1056_v51 = vsel %vm701_vm4, %v3227_v55, 0.0 }
 0x3c3   :  { %v923_v6 = vpop.xlane.xlu0 %922  ;;  %1057 = vadd.xlane.f32.xlu1 %v1056_v51 }
 0x3c4   :  { %2592 = vpow2.f32 %v1010_v48  ;;  %v975_v50 = vsub.f32 %v3094_v23, %v923_v6 }
 0x3c5   :  { %v3232_v52 = vpop.eup %2586 }
 0x3c6   :  { %v1008_v14 = vmul.f32 1.442695, %v975_v50  ;;  %v1053_v16 = vsel %vm701_vm4, %v3232_v52, 0.0 }
 0x3c7   :  { %v929_v63 = vpop.xlane.xlu0 %928  ;;  %1054 = vadd.xlane.f32.xlu0 %v1053_v16 }
 0x3c8   :  { %2594 = vpow2.f32 %v1008_v14  ;;  %v977_v56 = vsub.f32 %v3098_v58, %v929_v63 }
 0x3c9   :  { %v3237_v17 = vpop.eup %2588 }
 0x3ca   :  { %v1012_v7 = vmul.f32 1.442695, %v977_v56  ;;  %v1059_v19 = vsel %vm701_vm4, %v3237_v17, 0.0 }
 0x3cb   :  { %1060 = vadd.xlane.f32.xlu0 %v1059_v19  ;;  %v932_v57 = vpop.xlane.xlu1 %931 }
 0x3cc   :  { %2596 = vpow2.f32 %v1012_v7  ;;  %v978_v23 = vsub.f32 %v3110_v35, %v932_v57 }
 0x3cd   :  { %v3242_v21 = vpop.eup %2590 }
 0x3ce   :  { %v1014_v22 = vmul.f32 1.442695, %v978_v23  ;;  %v1062_v24 = vsel %vm701_vm4, %v3242_v21, 0.0 }
 0x3cf   :  { %1063 = vadd.xlane.f32.xlu1 %v1062_v24  ;;  %v938_v8 = vpop.xlane.xlu1 %937 }
 0x3d0   :  { %2598 = vpow2.f32 %v1014_v22  ;;  %v980_v58 = vsub.f32 %v3114_v60, %v938_v8 }
 0x3d1   :  { %v3247_v25 = vpop.eup %2592 }
 0x3d2   :  { %v1018_v26 = vmul.f32 1.442695, %v980_v58  ;;  %v1068_v28 = vsel %vm701_vm4, %v3247_v25, 0.0 }
 0x3d3   :  { %v935_v1 = vpop.xlane.xlu0 %934  ;;  %1069 = vadd.xlane.f32.xlu1 %v1068_v28 }
 0x3d4   :  { %2600 = vpow2.f32 %v1018_v26  ;;  %v979_v35 = vsub.f32 %v3126_v47, %v935_v1 }
 0x3d5   :  { %v3252_v29 = vpop.eup %2594 }
 0x3d6   :  { %v1016_v43 = vmul.f32 1.442695, %v979_v35  ;;  %v1065_v31 = vsel %vm701_vm4, %v3252_v29, 0.0 }
 0x3d7   :  { %v941_v45 = vpop.xlane.xlu0 %940  ;;  %1066 = vadd.xlane.f32.xlu0 %v1065_v31 }
 0x3d8   :  { %2602 = vpow2.f32 %v1016_v43  ;;  %v981_v60 = vsub.f32 %v3130_v62, %v941_v45 }
 0x3d9   :  { %v3257_v59 = vpop.eup %2596 }
 0x3da   :  { %v1020_v15 = vmul.f32 1.442695, %v981_v60  ;;  %v1071_v34 = vsel %vm701_vm4, %v3257_v59, 0.0  ;;  %v151_v60 = vld [vmem:[%s3546_s3 + $0x58] sm:$0xff] }
 0x3db   :  { %1072 = vadd.xlane.f32.xlu0 %v1071_v34  ;;  %v944_v18 = vpop.xlane.xlu1 %943  ;;  %2430 = vmatprep.subr.mxu0 %v151_v60 }
 0x3dc   :  { %2604 = vpow2.f32 %v1020_v15  ;;  %v982_v47 = vsub.f32 %v3142_v20, %v944_v18 }
 0x3dd   :  { %v3262_v36 = vpop.eup %2598 }
 0x3de   :  { %v1022_v27 = vmul.f32 1.442695, %v982_v47  ;;  %v1074_v37 = vsel %vm701_vm4, %v3262_v36, 0.0 }
 0x3df   :  { %1075 = vadd.xlane.f32.xlu1 %v1074_v37  ;;  %v950_v38 = vpop.xlane.xlu1 %949 }
 0x3e0   :  { %2606 = vpow2.f32 %v1022_v27  ;;  %v984_v62 = vsub.f32 %v3146_v0, %v950_v38 }
 0x3e1   :  { %v3267_v40 = vpop.eup %2600 }
 0x3e2   :  { %v1026_v30 = vmul.f32 1.442695, %v984_v62  ;;  %v1080_v41 = vsel %vm701_vm4, %v3267_v40, 0.0 }
 0x3e3   :  { %v947_v11 = vpop.xlane.xlu0 %946  ;;  %1081 = vadd.xlane.f32.xlu1 %v1080_v41 }
 0x3e4   :  { %2608 = vpow2.f32 %v1026_v30  ;;  %v983_v20 = vsub.f32 %v3158_v32, %v947_v11 }
 0x3e5   :  { %v3272_v53 = vpop.eup %2602 }
 0x3e6   :  { %v1024_v39 = vmul.f32 1.442695, %v983_v20  ;;  %v1077_v54 = vsel %vm701_vm4, %v3272_v53, 0.0 }
 0x3e7   :  { %v953_v5 = vpop.xlane.xlu0 %952  ;;  %1078 = vadd.xlane.f32.xlu0 %v1077_v54 }
 0x3e8   :  { %2610 = vpow2.f32 %v1024_v39  ;;  %v985_v0 = vsub.f32 %v3162_v3, %v953_v5 }
 0x3e9   :  { %v3277_v46 = vpop.eup %2604 }
 0x3ea   :  { %v1028_v42 = vmul.f32 1.442695, %v985_v0  ;;  %v1083_v48 = vsel %vm701_vm4, %v3277_v46, 0.0 }
 0x3eb   :  { %1084 = vadd.xlane.f32.xlu0 %v1083_v48  ;;  %v956_v51 = vpop.xlane.xlu1 %955 }
 0x3ec   :  { %2612 = vpow2.f32 %v1028_v42  ;;  %v986_v32 = vsub.f32 %v3174_v44, %v956_v51 }
 0x3ed   :  { %v3282_v6 = vpop.eup %2606 }
 0x3ee   :  { %v1030_v50 = vmul.f32 1.442695, %v986_v32  ;;  %v1086_v14 = vsel %vm701_vm4, %v3282_v6, 0.0  ;;  %v147_v32 = vld [vmem:[%s3546_s3 + $0x38] sm:$0xff] }
 0x3ef   :  { %v959_v16 = vpop.xlane.xlu0 %958  ;;  %1087 = vadd.xlane.f32.xlu1 %v1086_v14  ;;  %v962_v3 = vpop.xlane.xlu1 %961  ;;  %v146_v14 = vld [vmem:[%s3546_s3 + $0x30] sm:$0xff] }
 0x3f0   :  { %2614 = vpow2.f32 %v1030_v50  ;;  %v987_v63 = vsub.f32 %v3184_v49, %v959_v16  ;;  %v988_v56 = vsub.f32 %v3181_v13, %v962_v3 }
 0x3f1   :  { %v3288_v7 = vpop.eup %2608 }
 0x3f2   :  { %v1032_v19 = vmul.f32 1.442695, %v987_v63  ;;  %v1034_v57 = vmul.f32 1.442695, %v988_v56  ;;  %v1092_v44 = vsel %vm701_vm4, %v3288_v7, 0.0 }
 0x3f3   :  { %v965_v23 = vpop.xlane.xlu0 %964  ;;  %1093 = vadd.xlane.f32.xlu1 %v1092_v44 }
 0x3f4   :  { %2616 = vpow2.f32 %v1032_v19  ;;  %v989_v22 = vsub.f32 %v3193_v12, %v965_v23 }
 0x3f5   :  { %v3293_v24 = vpop.eup %2610  ;;  %2618 = vpow2.f32 %v1034_v57  ;;  %v145_v57 = vld [vmem:[%s3546_s3 + $0x28] sm:$0xff] }
 0x3f6   :  { %v1036_v8 = vmul.f32 1.442695, %v989_v22  ;;  %v1089_v49 = vsel %vm701_vm4, %v3293_v24, 0.0 }
 0x3f7   :  { %1090 = vadd.xlane.f32.xlu0 %v1089_v49 }
 0x3f8   :  { %2620 = vpow2.f32 %v1036_v8 }
 0x3f9   :  { %v3297_v13 = vpop.eup %2612 }
 0x3fa   :  { %v1095_v58 = vsel %vm701_vm4, %v3297_v13, 0.0 }
 0x3fb   :  { %1096 = vadd.xlane.f32.xlu0 %v1095_v58 }
 0x3fd   :  { %v3301_v26 = vpop.eup %2614 }
 0x3fe   :  { %v1098_v12 = vsel %vm701_vm4, %v3301_v26, 0.0 }
 0x3ff   :  { %1099 = vadd.xlane.f32.xlu1 %v1098_v12 }
 0x401   :  { %v3305_v28 = vpop.eup %2616 }
 0x402   :  { %v3307_v1 = vpop.eup %2618  ;;  %v1101_v35 = vsel %vm701_vm4, %v3305_v28, 0.0 }
 0x403   :  { %1102 = vadd.xlane.f32.xlu0 %v1101_v35  ;;  %v1104_v43 = vsel %vm701_vm4, %v3307_v1, 0.0 }
 0x404   :  { %1105 = vadd.xlane.f32.xlu1 %v1104_v43 }
 0x405   :  { %v3313_v31 = vpop.eup %2620 }
 0x406   :  { %v1107_v45 = vsel %vm701_vm4, %v3313_v31, 0.0 }
 0x407   :  { %1108 = vadd.xlane.f32.xlu0 %v1107_v45 }
 0x438   :  { %v1040_v15 = vpop.xlane.xlu1 %1039 }
 0x439   :  { %2622 = vrcp.f32 %v1040_v15 }
 0x43c   :  { %v1046_v34 = vpop.xlane.xlu1 %1045 }
 0x440   :  { %v1043_v18 = vpop.xlane.xlu0 %1042 }
 0x441   :  { %2624 = vrcp.f32 %v1043_v18 }
 0x442   :  { %2626 = vrcp.f32 %v1046_v34 }
 0x444   :  { %v1049_v47 = vpop.xlane.xlu0 %1048 }
 0x445   :  { %2628 = vrcp.f32 %v1049_v47 }
 0x446   :  { %v2623_v37 = vpop.eup %2622 }
 0x447   :  { %v1134_v62 = vmul.f32 %v2623_v37, %v3202_v9  ;;  %v150_v9 = vld [vmem:[%s3546_s3 + $0x50] sm:$0xff] }
 0x448   :  { %v1052_v27 = vpop.xlane.xlu1 %1051 }
 0x449   :  { %2630 = vrcp.f32 %v1052_v27 }
 0x44c   :  { %v1058_v11 = vpop.xlane.xlu1 %1057 }
 0x44e   :  { %v2625_v38 = vpop.eup %2624 }
 0x44f   :  { %v1135_v30 = vmul.f32 %v2625_v38, %v3212_v10  ;;  %v2627_v41 = vpop.eup %2626  ;;  %v149_v10 = vld [vmem:[%s3546_s3 + $0x48] sm:$0xff] }
 0x450   :  { %v1055_v20 = vpop.xlane.xlu0 %1054  ;;  %v1136_v5 = vmul.f32 %v2627_v41, %v3207_v33  ;;  %v148_v33 = vld [vmem:[%s3546_s3 + $0x40] sm:$0xff] }
 0x451   :  { %2632 = vrcp.f32 %v1055_v20  ;;  %v1158_v39 = vpack.c.bf16 %v1135_v30, %v1134_v62 }
 0x452   :  { %v2629_v54 = vpop.eup %2628  ;;  %2634 = vrcp.f32 %v1058_v11 }
 0x453   :  { %2406 = vmatprep.mubr.msk.bf16.mxu0 %vm701_vm4, %v1158_v39  ;;  %v1137_v0 = vmul.f32 %v2629_v54, %v3217_v4 }
 0x454   :  { %v1061_v42 = vpop.xlane.xlu0 %1060 }
 0x455   :  { %2636 = vrcp.f32 %v1061_v42  ;;  %v1159_v48 = vpack.c.bf16 %v1137_v0, %v1136_v5 }
 0x456   :  { %v2631_v4 = vpop.eup %2630 }
 0x457   :  { %2407 = vmatmul.mubr.msk.bf16.vlgmr.msra.gmra.mxu0 %vm701_vm4, %v1159_v48  ;;  %v1138_v16 = vmul.f32 %v2631_v4, %v3222_v61  ;;  %v144_v61 = vld [vmem:[%s3546_s3 + $0x20] sm:$0xff] }
 0x458   :  { %2431 = vmatpush3.msra.mxu0 %v151_v60  ;;  %v1064_v51 = vpop.xlane.xlu1 %1063 }
 0x459   :  { %2432 = vmatprep.subr.mxu0 %v150_v9  ;;  %2638 = vrcp.f32 %v1064_v51 }
 0x45a   :  { %2433 = vmatpush3.msra.mxu0 %v150_v9 }
 0x45b   :  { %2434 = vmatprep.subr.mxu0 %v149_v10 }
 0x45c   :  { %2435 = vmatpush3.msra.mxu0 %v149_v10  ;;  %v1070_v56 = vpop.xlane.xlu1 %1069 }
 0x45d   :  { %2436 = vmatprep.subr.mxu0 %v148_v33 }
 0x45e   :  { %v2633_v50 = vpop.eup %2632  ;;  %2437 = vmatpush3.msra.mxu0 %v148_v33 }
 0x45f   :  { %v1139_v3 = vmul.f32 %v2633_v50, %v3232_v52  ;;  %2438 = vmatprep.subr.mxu0 %v147_v32  ;;  %v2635_v63 = vpop.eup %2634 }
 0x460   :  { %v1067_v19 = vpop.xlane.xlu0 %1066  ;;  %2439 = vmatpush3.msra.mxu0 %v147_v32  ;;  %v1140_v52 = vmul.f32 %v2635_v63, %v3227_v55 }
 0x461   :  { %2640 = vrcp.f32 %v1067_v19  ;;  %v1160_v44 = vpack.c.bf16 %v1139_v3, %v1138_v16  ;;  %2440 = vmatprep.subr.mxu0 %v146_v14  ;;  %v142_v3 = vld [vmem:[%s3546_s3 + $0x10] sm:$0xff] }
 0x462   :  { %v2637_v23 = vpop.eup %2636  ;;  %2441 = vmatpush3.msra.mxu0 %v146_v14  ;;  %2642 = vrcp.f32 %v1070_v56  ;;  %v141_v56 = vld [vmem:[%s3546_s3 + $0x8] sm:$0xff] }
 0x463   :  { %2410 = vmatprep.mubr.msk.bf16.mxu0 %vm701_vm4, %v1160_v44  ;;  %v1141_v22 = vmul.f32 %v2637_v23, %v3237_v17  ;;  %2442 = vmatprep.subr.mxu0 %v145_v57  ;;  %v140_v44 = vld [vmem:[%s3546_s3] sm:$0xff] }
 0x464   :  { %v1073_v8 = vpop.xlane.xlu0 %1072  ;;  %2443 = vmatpush3.msra.mxu0 %v145_v57 }
 0x465   :  { %2644 = vrcp.f32 %v1073_v8  ;;  %v1161_v49 = vpack.c.bf16 %v1141_v22, %v1140_v52  ;;  %2444 = vmatprep.subr.mxu0 %v144_v61  ;;  %v2219_v8 = vld [vmem:[%s3545_s2 + $0xd0] sm:$0xff]  }
 0x466   :  { %2445 = vmatpush3.msra.mxu0 %v144_v61  ;;  %v2639_v12 = vpop.eup %2638  ;;  %v2218_v61 = vld [vmem:[%s3545_s2 + $0xc8] sm:$0xff]  }
 0x467   :  { %2411 = vmatmul.mubr.msk.bf16.gmra.mxu0 %vm701_vm4, %v1161_v49  ;;  %v1142_v43 = vmul.f32 %v2639_v12, %v3242_v21  ;;  %v2172_v52 = vunpack.c.l.bf16 %v2218_v61  ;;  %v2176_v12 = vunpack.c.l.bf16 %v2219_v8 }
 0x468   :  { %v1076_v58 = vpop.xlane.xlu1 %1075 }
 0x469   :  { %2646 = vrcp.f32 %v1076_v58 }
 0x46c   :  { %v1082_v60 = vpop.xlane.xlu1 %1081 }
 0x46e   :  { %v2641_v35 = vpop.eup %2640 }
 0x46f   :  { %v1143_v45 = vmul.f32 %v2641_v35, %v3252_v29  ;;  %v2643_v55 = vpop.eup %2642 }
 0x470   :  { %v1079_v17 = vpop.xlane.xlu0 %1078  ;;  %v1144_v18 = vmul.f32 %v2643_v55, %v3247_v25 }
 0x471   :  { %2648 = vrcp.f32 %v1079_v17  ;;  %v1162_v15 = vpack.c.bf16 %v1143_v45, %v1142_v43  ;;  %v2177_v43 = vunpack.c.h.bf16 %v2219_v8  ;;  %v2220_v17 = vld [vmem:[%s3545_s2 + $0xd8] sm:$0xff]  }
 0x472   :  { %v2645_v34 = vpop.eup %2644  ;;  %2650 = vrcp.f32 %v1082_v60 }
 0x473   :  { %2414 = vmatprep.mubr.msk.bf16.mxu0 %vm701_vm4, %v1162_v15  ;;  %v1145_v47 = vmul.f32 %v2645_v34, %v3257_v59  ;;  %v2180_v15 = vunpack.c.l.bf16 %v2220_v17 }
 0x474   :  { %v1085_v27 = vpop.xlane.xlu0 %1084 }
 0x475   :  { %2652 = vrcp.f32 %v1085_v27  ;;  %v1163_v37 = vpack.c.bf16 %v1145_v47, %v1144_v18  ;;  %v2221_v18 = vld [vmem:[%s3545_s2 + $0xe0] sm:$0xff]  }
 0x476   :  { %v2647_v29 = vpop.eup %2646 }
 0x477   :  { %2415 = vmatmul.mubr.msk.bf16.gmra.mxu0 %vm701_vm4, %v1163_v37  ;;  %v1146_v62 = vmul.f32 %v2647_v29, %v3262_v36  ;;  %v2181_v37 = vunpack.c.h.bf16 %v2220_v17 }
 0x478   :  { %v1088_v21 = vpop.xlane.xlu1 %1087 }
 0x479   :  { %2654 = vrcp.f32 %v1088_v21  ;;  %v2184_v21 = vunpack.c.l.bf16 %v2221_v18 }
 0x47c   :  { %v1094_v11 = vpop.xlane.xlu1 %1093 }
 0x47e   :  { %v2649_v38 = vpop.eup %2648 }
 0x47f   :  { %v1147_v30 = vmul.f32 %v2649_v38, %v3272_v53  ;;  %v2651_v41 = vpop.eup %2650 }
 0x480   :  { %v1091_v20 = vpop.xlane.xlu0 %1090  ;;  %v1148_v59 = vmul.f32 %v2651_v41, %v3267_v40 }
 0x481   :  { %2656 = vrcp.f32 %v1091_v20  ;;  %v1164_v25 = vpack.c.bf16 %v1147_v30, %v1146_v62  ;;  %v2185_v62 = vunpack.c.h.bf16 %v2221_v18  ;;  %v2222_v20 = vld [vmem:[%s3545_s2 + $0xe8] sm:$0xff]  }
 0x482   :  { %v2653_v39 = vpop.eup %2652  ;;  %2658 = vrcp.f32 %v1094_v11 }
 0x483   :  { %2418 = vmatprep.mubr.msk.bf16.mxu0 %vm701_vm4, %v1164_v25  ;;  %v1149_v54 = vmul.f32 %v2653_v39, %v3277_v46  ;;  %v2188_v25 = vunpack.c.l.bf16 %v2222_v20 }
 0x484   :  { %v1097_v5 = vpop.xlane.xlu0 %1096 }
 0x485   :  { %2660 = vrcp.f32 %v1097_v5  ;;  %v1165_v0 = vpack.c.bf16 %v1149_v54, %v1148_v59  ;;  %v2223_v59 = vld [vmem:[%s3545_s2 + $0xf0] sm:$0xff]  }
 0x486   :  { %v2655_v53 = vpop.eup %2654 }
 0x487   :  { %2419 = vmatmul.mubr.msk.bf16.gmra.mxu0 %vm701_vm4, %v1165_v0  ;;  %v1150_v10 = vmul.f32 %v2655_v53, %v3282_v6  ;;  %v143_v6 = vld [vmem:[%s3546_s3 + $0x18] sm:$0xff]  ;;  %v2189_v0 = vunpack.c.h.bf16 %v2222_v20 }
 0x488   :  { %v1100_v36 = vpop.xlane.xlu1 %1099  ;;  %2446 = vmatprep.subr.mxu0 %v143_v6 }
 0x489   :  { %2662 = vrcp.f32 %v1100_v36  ;;  %2447 = vmatpush3.msra.mxu0 %v143_v6  ;;  %v2192_v36 = vunpack.c.l.bf16 %v2223_v59 }
 0x48a   :  { %2448 = vmatprep.subr.mxu0 %v142_v3 }
 0x48b   :  { %2449 = vmatpush3.msra.mxu0 %v142_v3 }
 0x48c   :  { %v1103_v42 = vpop.xlane.xlu0 %1102  ;;  %2450 = vmatprep.subr.mxu0 %v141_v56 }
 0x48d   :  { %2664 = vrcp.f32 %v1103_v42  ;;  %v1106_v48 = vpop.xlane.xlu1 %1105  ;;  %2451 = vmatpush3.msra.mxu0 %v141_v56  ;;  %v2226_v56 = vld [vmem:[%s3545_s2 + $0x108] sm:$0xff]  }
 0x48e   :  { %v2657_v9 = vpop.eup %2656  ;;  %2666 = vrcp.f32 %v1106_v48  ;;  %2452 = vmatprep.subr.mxu0 %v140_v44  ;;  %v2193_v48 = vunpack.c.h.bf16 %v2223_v59 }
 0x48f   :  { %v1151_v51 = vmul.f32 %v2657_v9, %v3293_v24  ;;  %v2659_v40 = vpop.eup %2658  ;;  %2453 = vmatpush3.msra.mxu0 %v140_v44  ;;  %v2227_v44 = vld [vmem:[%s3545_s2 + $0x110] sm:$0xff]  }
 0x490   :  { %v1109_v33 = vpop.xlane.xlu0 %1108  ;;  %v1152_v32 = vmul.f32 %v2659_v40, %v3288_v7  ;;  %v2224_v40 = vld [vmem:[%s3545_s2 + $0xf8] sm:$0xff]   ;;  %v2209_v8 = vunpack.c.h.bf16 %v2227_v44 }
 0x491   :  { %2668 = vrcp.f32 %v1109_v33  ;;  %v1166_v46 = vpack.c.bf16 %v1151_v51, %v1150_v10  ;;  %v2196_v33 = vunpack.c.l.bf16 %v2224_v40 }
 0x492   :  { %v2661_v4 = vpop.eup %2660 }
 0x493   :  { %2422 = vmatprep.mubr.msk.bf16.mxu0 %vm701_vm4, %v1166_v46  ;;  %v1153_v50 = vmul.f32 %v2661_v4, %v3297_v13  ;;  %v2225_v4 = vld [vmem:[%s3545_s2 + $0x100] sm:$0xff]  }
 0x494   :  { %v2201_v3 = vunpack.c.h.bf16 %v2225_v4 }
 0x495   :  { %v1167_v14 = vpack.c.bf16 %v1153_v50, %v1152_v32 }
 0x496   :  { %v2663_v16 = vpop.eup %2662 }
 0x497   :  { %2423 = vmatmul.mubr.msk.bf16.gmra.mxu0 %vm701_vm4, %v1167_v14  ;;  %v1154_v63 = vmul.f32 %v2663_v16, %v3301_v26  ;;  %v2197_v14 = vunpack.c.h.bf16 %v2224_v40  ;;  %v2200_v16 = vunpack.c.l.bf16 %v2225_v4 }
 0x49a   :  { %v2665_v24 = vpop.eup %2664 }
 0x49b   :  { %v1155_v7 = vmul.f32 %v2665_v24, %v3305_v28  ;;  %v2667_v13 = vpop.eup %2666 }
 0x49c   :  { %v1156_v26 = vmul.f32 %v2667_v13, %v3307_v1  ;;  %v2173_v1 = vunpack.c.h.bf16 %v2218_v61  ;;  %v2208_v61 = vunpack.c.l.bf16 %v2227_v44 }
 0x49d   :  { %v1168_v19 = vpack.c.bf16 %v1155_v7, %v1154_v63 }
 0x49e   :  { %v2669_v57 = vpop.eup %2668 }
 0x49f   :  { %2426 = vmatprep.mubr.msk.bf16.mxu0 %vm701_vm4, %v1168_v19  ;;  %v1157_v28 = vmul.f32 %v2669_v57, %v3313_v31  ;;  %v2204_v19 = vunpack.c.l.bf16 %v2226_v56 }
 0x4a1   :  { %v1169_v23 = vpack.c.bf16 %v1157_v28, %v1156_v26 }
 0x4a3   :  { %2427 = vmatmul.mubr.msk.bf16.gmra.mxu0 %vm701_vm4, %v1169_v23  ;;  %v2205_v23 = vunpack.c.h.bf16 %v2226_v56 }
 0x517   :  { %v2408_v22 = vpop.f32.mrf.mxu0 }
 0x518   :  { %v1361_v55 = vmul.f32 %v2408_v22, %v2176_v12 }
 0x519   :  { %v1240_v49 = vpop.f32.mrf.mxu0 }
 0x51a   :  { %v1359_v58 = vmul.f32 %v2172_v52, %v1240_v49 }
 0x51b   :  { %v2409_v31 = vpop.f32.mrf.mxu0 }
 0x51c   :  { %2454 = vmatprep.mubr.msk.f32.mxu0 %vm379_vm3, %v1359_v58  ;;  %v1362_v60 = vmul.f32 %v2409_v31, %v2177_v43  ;;  %v2229_v43 = vld [vmem:[%s3545_s2 + $0x120] sm:$0xff]  }
 0x51d   :  { %v1243_v35 = vpop.f32.mrf.mxu0  ;;  %v2216_v17 = vunpack.c.l.bf16 %v2229_v43  ;;  %v2217_v18 = vunpack.c.h.bf16 %v2229_v43 }
 0x51e   :  { %v1360_v45 = vmul.f32 %v2173_v1, %v1243_v35  ;;  %v2228_v1 = vld [vmem:[%s3545_s2 + $0x118] sm:$0xff]  }
 0x51f   :  { %v2212_v31 = vunpack.c.l.bf16 %v2228_v1 }
 0x520   :  { %2455 = vmatmul.mubr.msk.f32.vlgmr.msra.gmra.mxu0 %vm379_vm3, %v1360_v45 }
 0x521   :  { %2457 = vmatprep.mubr.msk.f32.mxu0 %vm379_vm3, %v1361_v55 }
 0x524   :  { %2458 = vmatmul.mubr.msk.f32.gmra.mxu0 %vm379_vm3, %v1362_v60  ;;  %v2213_v60 = vunpack.c.h.bf16 %v2228_v1 }
 0x527   :  { %v2412_v34 = vpop.f32.mrf.mxu0 }
 0x528   :  { %v1365_v41 = vmul.f32 %v2412_v34, %v2184_v21  ;;  %v161_v21 = vld [vmem:[%s3546_s3 + $0xa8] sm:$0xff] }
 0x529   :  { %v1256_v47 = vpop.f32.mrf.mxu0  ;;  %2490 = vmatprep.subr.mxu0 %v161_v21 }
 0x52a   :  { %v1363_v27 = vmul.f32 %v2180_v15, %v1256_v47  ;;  %2491 = vmatpush3.msra.mxu0 %v161_v21 }
 0x52b   :  { %v2413_v29 = vpop.f32.mrf.mxu0 }
 0x52c   :  { %2460 = vmatprep.mubr.msk.f32.mxu0 %vm379_vm3, %v1363_v27  ;;  %v1366_v11 = vmul.f32 %v2413_v29, %v2185_v62  ;;  %v160_v29 = vld [vmem:[%s3546_s3 + $0xa0] sm:$0xff]  ;;  %v158_v62 = vld [vmem:[%s3546_s3 + $0x90] sm:$0xff] }
 0x52d   :  { %v1259_v38 = vpop.f32.mrf.mxu0  ;;  %2492 = vmatprep.subr.mxu0 %v160_v29 }
 0x52e   :  { %v1364_v30 = vmul.f32 %v2181_v37, %v1259_v38  ;;  %2493 = vmatpush3.msra.mxu0 %v160_v29  ;;  %v159_v38 = vld [vmem:[%s3546_s3 + $0x98] sm:$0xff] }
 0x52f   :  { %2494 = vmatprep.subr.mxu0 %v159_v38 }
 0x530   :  { %2461 = vmatmul.mubr.msk.f32.gmra.mxu0 %vm379_vm3, %v1364_v30 }
 0x531   :  { %2463 = vmatprep.mubr.msk.f32.mxu0 %vm379_vm3, %v1365_v41  ;;  %2495 = vmatpush3.msra.mxu0 %v159_v38 }
 0x532   :  { %2496 = vmatprep.subr.mxu0 %v158_v62 }
 0x533   :  { %2497 = vmatpush3.msra.mxu0 %v158_v62 }
 0x534   :  { %2464 = vmatmul.mubr.msk.f32.gmra.mxu0 %vm379_vm3, %v1366_v11 }
 0x537   :  { %v2416_v39 = vpop.f32.mrf.mxu0 }
 0x538   :  { %v1369_v10 = vmul.f32 %v2416_v39, %v2192_v36 }
 0x539   :  { %v1272_v54 = vpop.f32.mrf.mxu0 }
 0x53a   :  { %v1367_v5 = vmul.f32 %v2188_v25, %v1272_v54 }
 0x53b   :  { %v2417_v53 = vpop.f32.mrf.mxu0 }
 0x53c   :  { %2466 = vmatprep.mubr.msk.f32.mxu0 %vm379_vm3, %v1367_v5  ;;  %v1370_v51 = vmul.f32 %v2417_v53, %v2193_v48 }
 0x53d   :  { %v1275_v42 = vpop.f32.mrf.mxu0 }
 0x53e   :  { %v1368_v9 = vmul.f32 %v2189_v0, %v1275_v42 }
 0x540   :  { %2467 = vmatmul.mubr.msk.f32.gmra.mxu0 %vm379_vm3, %v1368_v9 }
 0x541   :  { %2469 = vmatprep.mubr.msk.f32.mxu0 %vm379_vm3, %v1369_v10 }
 0x544   :  { %2470 = vmatmul.mubr.msk.f32.gmra.mxu0 %vm379_vm3, %v1370_v51 }
 0x547   :  { %v2420_v46 = vpop.f32.mrf.mxu0 }
 0x548   :  { %v1373_v7 = vmul.f32 %v2420_v46, %v2200_v16 }
 0x549   :  { %v1288_v32 = vpop.f32.mrf.mxu0 }
 0x54a   :  { %v1371_v50 = vmul.f32 %v2196_v33, %v1288_v32  ;;  %v153_v32 = vld [vmem:[%s3546_s3 + $0x68] sm:$0xff] }
 0x54b   :  { %v2421_v6 = vpop.f32.mrf.mxu0 }
 0x54c   :  { %2472 = vmatprep.mubr.msk.f32.mxu0 %vm379_vm3, %v1371_v50  ;;  %v1374_v13 = vmul.f32 %v2421_v6, %v2201_v3  ;;  %v152_v6 = vld [vmem:[%s3546_s3 + $0x60] sm:$0xff] }
 0x54d   :  { %v1291_v24 = vpop.f32.mrf.mxu0 }
 0x54e   :  { %v1372_v63 = vmul.f32 %v2197_v14, %v1291_v24 }
 0x550   :  { %2473 = vmatmul.mubr.msk.f32.gmra.mxu0 %vm379_vm3, %v1372_v63 }
 0x551   :  { %2475 = vmatprep.mubr.msk.f32.mxu0 %vm379_vm3, %v1373_v7 }
 0x554   :  { %2476 = vmatmul.mubr.msk.f32.gmra.mxu0 %vm379_vm3, %v1374_v13 }
 0x557   :  { %v2424_v57 = vpop.f32.mrf.mxu0 }
 0x558   :  { %v1377_v58 = vmul.f32 %v2424_v57, %v2208_v61 }
 0x559   :  { %v1304_v26 = vpop.f32.mrf.mxu0 }
 0x55a   :  { %v1375_v28 = vmul.f32 %v2204_v19, %v1304_v26  ;;  %v155_v26 = vld [vmem:[%s3546_s3 + $0x78] sm:$0xff] }
 0x55b   :  { %v2425_v52 = vpop.f32.mrf.mxu0 }
 0x55c   :  { %2478 = vmatprep.mubr.msk.f32.mxu0 %vm379_vm3, %v1375_v28  ;;  %v1378_v12 = vmul.f32 %v2425_v52, %v2209_v8 }
 0x55d   :  { %v1307_v22 = vpop.f32.mrf.mxu0 }
 0x55e   :  { %v1376_v49 = vmul.f32 %v2205_v23, %v1307_v22  ;;  %v154_v22 = vld [vmem:[%s3546_s3 + $0x70] sm:$0xff] }
 0x560   :  { %2479 = vmatmul.mubr.msk.f32.gmra.mxu0 %vm379_vm3, %v1376_v49 }
 0x561   :  { %2481 = vmatprep.mubr.msk.f32.mxu0 %vm379_vm3, %v1377_v58 }
 0x563   :  { %v2428_v35 = vpop.f32.mrf.mxu0 }
 0x564   :  { %2482 = vmatmul.mubr.msk.f32.gmra.mxu0 %vm379_vm3, %v1378_v12  ;;  %v1381_v27 = vmul.f32 %v2428_v35, %v2216_v17  ;;  %v156_v17 = vld [vmem:[%s3546_s3 + $0x80] sm:$0xff] }
 0x565   :  { %v1320_v45 = vpop.f32.mrf.mxu0 }
 0x566   :  { %v1379_v55 = vmul.f32 %v2212_v31, %v1320_v45  ;;  %v157_v31 = vld [vmem:[%s3546_s3 + $0x88] sm:$0xff] }
 0x567   :  { %v2429_v15 = vpop.f32.mrf.mxu0 }
 0x568   :  { %2484 = vmatprep.mubr.msk.f32.mxu0 %vm379_vm3, %v1379_v55  ;;  %v1382_v37 = vmul.f32 %v2429_v15, %v2217_v18 }
 0x569   :  { %v1323_v34 = vpop.f32.mrf.mxu0 }
 0x56a   :  { %v1380_v47 = vmul.f32 %v2213_v60, %v1323_v34 }
 0x56c   :  { %2485 = vmatmul.mubr.msk.f32.gmra.mxu0 %vm379_vm3, %v1380_v47 }
 0x56d   :  { %2487 = vmatprep.mubr.msk.f32.mxu0 %vm379_vm3, %v1381_v27 }
 0x570   :  { %2488 = vmatmul.mubr.msk.f32.gmra.mxu0 %vm379_vm3, %v1382_v37  ;;  %vm1698_vm3 = vcmask 261120  }
 0x5e0   :  { %v2456_v30 = vpop.f32.mrf.mxu0 }
 0x5e2   :  { %v1521_v41 = vpop.f32.mrf.mxu0 }
 0x5e4   :  { %v2459_v11 = vpop.f32.mrf.mxu0 }
 0x5e6   :  { %v1531_v20 = vpop.f32.mrf.mxu0 }
 0x5f0   :  { %v2462_v25 = vpop.f32.mrf.mxu0 }
 0x5f2   :  { %v1541_v39 = vpop.f32.mrf.mxu0 }
 0x5f4   :  { %v2465_v59 = vpop.f32.mrf.mxu0 }
 0x5f5   :  { %v1641_v40 = vadd.f32 %v2465_v59, %v2456_v30 }
 0x5f6   :  { %v1551_v54 = vpop.f32.mrf.mxu0 }
 0x5f7   :  { %v1640_v46 = vadd.f32 %v1551_v54, %v1521_v41 }
 0x600   :  { %v2468_v5 = vpop.f32.mrf.mxu0 }
 0x601   :  { %v1643_v7 = vadd.f32 %v2468_v5, %v2459_v11 }
 0x602   :  { %v1561_v0 = vpop.f32.mrf.mxu0 }
 0x603   :  { %v1642_v19 = vadd.f32 %v1561_v0, %v1531_v20 }
 0x604   :  { %v2471_v36 = vpop.f32.mrf.mxu0 }
 0x605   :  { %v1645_v23 = vadd.f32 %v2471_v36, %v2462_v25 }
 0x606   :  { %v1571_v53 = vpop.f32.mrf.mxu0 }
 0x607   :  { %v1644_v49 = vadd.f32 %v1571_v53, %v1541_v39 }
 0x610   :  { %v2474_v42 = vpop.f32.mrf.mxu0 }
 0x611   :  { %v1647_v4 = vadd.f32 %v2474_v42, %v1641_v40  ;;  %v164_v40 = vld [vmem:[%s3546_s3 + $0xc0] sm:$0xff] }
 0x612   :  { %v1581_v48 = vpop.f32.mrf.mxu0 }
 0x613   :  { %v1646_v14 = vadd.f32 %v1640_v46, %v1581_v48  ;;  %v2156_v46 = vld [vmem:[%s3546_s3 + $0xb0] ss:$0 sm:$0xff] }
 0x614   :  { %v2477_v9 = vpop.f32.mrf.mxu0 }
 0x615   :  { %v1649_v57 = vadd.f32 %v2477_v9, %v1643_v7 }
 0x616   :  { %v1591_v10 = vpop.f32.mrf.mxu0 }
 0x617   :  { %v1648_v61 = vadd.f32 %v1642_v19, %v1591_v10  ;;  %v166_v10 = vld [vmem:[%s3546_s3 + $0xd0] sm:$0xff] }
 0x618   :  { %2507 = vmatprep.subr.mxu0 %v166_v10 }
 0x620   :  { %v2480_v51 = vpop.f32.mrf.mxu0 }
 0x621   :  { %v1651_v58 = vadd.f32 %v2480_v51, %v1645_v23  ;;  %v165_v51 = vld [vmem:[%s3546_s3 + $0xc8] sm:$0xff] }
 0x622   :  { %v1601_v33 = vpop.f32.mrf.mxu0 }
 0x623   :  { %v1650_v43 = vadd.f32 %v1644_v49, %v1601_v33  ;;  %v163_v33 = vld [vmem:[%s3546_s3 + $0xb8] sm:$0xff] }
 0x624   :  { %v2483_v50 = vpop.f32.mrf.mxu0 }
 0x625   :  { %v1653_v16 = vadd.f32 %v2483_v50, %v1647_v4 }
 0x626   :  { %v1611_v24 = vpop.f32.mrf.mxu0 }
 0x627   :  { %v1659_v3 = vadd.f32 %v1653_v16, %v153_v32  ;;  %v1652_v63 = vadd.f32 %v1646_v14, %v1611_v24 }
 0x629   :  { %v1672_v13 = vmul.f32 1.442695, %v1659_v3  ;;  %v1658_v56 = vadd.f32 %v1652_v63, %v152_v6  ;;  %vm1665_vm15 = vcmp.gt.f32.partialorder %v1659_v3, 0.0 }
 0x62b   :  { %2670 = vpow2.f32 %v1672_v13  ;;  %v1670_v44 = vmul.f32 1.442695, %v1658_v56  ;;  %vm1664_vm4 = vcmp.gt.f32.partialorder %v1658_v56, 0.0 }
 0x62c   :  { %v2486_v28 = vpop.f32.mrf.mxu0 }
 0x62d   :  { %2672 = vpow2.f32 %v1670_v44  ;;  %v1655_v52 = vadd.f32 %v2486_v28, %v1649_v57 }
 0x62e   :  { %v1621_v8 = vpop.f32.mrf.mxu0 }
 0x62f   :  { %v1661_v1 = vadd.f32 %v1655_v52, %v155_v26  ;;  %v1654_v12 = vadd.f32 %v1648_v61, %v1621_v8 }
 0x630   :  { %v2489_v35 = vpop.f32.mrf.mxu0 }
 0x631   :  { %v1676_v45 = vmul.f32 1.442695, %v1661_v1  ;;  %v1660_v55 = vadd.f32 %v1654_v12, %v154_v22  ;;  %v1657_v60 = vadd.f32 %v2489_v35, %v1651_v58  ;;  %vm1667_vm1 = vcmp.gt.f32.partialorder %v1661_v1, 0.0 }
 0x632   :  { %v1631_v15 = vpop.f32.mrf.mxu0 }
 0x633   :  { %2674 = vpow2.f32 %v1676_v45  ;;  %v1674_v34 = vmul.f32 1.442695, %v1660_v55  ;;  %v1663_v18 = vadd.f32 %v1657_v60, %v157_v31  ;;  %v1656_v47 = vadd.f32 %v1650_v43, %v1631_v15 }
 0x634   :  { %vm1666_vm0 = vcmp.gt.f32.partialorder %v1660_v55, 0.0 }
 0x635   :  { %2676 = vpow2.f32 %v1674_v34  ;;  %v1680_v27 = vmul.f32 1.442695, %v1663_v18  ;;  %v1662_v37 = vadd.f32 %v1656_v47, %v156_v17  ;;  %vm1669_vm5 = vcmp.gt.f32.partialorder %v1663_v18, 0.0 }
 0x637   :  { %2678 = vpow2.f32 %v1680_v27  ;;  %v1678_v21 = vmul.f32 1.442695, %v1662_v37  ;;  %vm1668_vm2 = vcmp.gt.f32.partialorder %v1662_v37, 0.0 }
 0x638   :  { %v2671_v29 = vpop.eup %2670 }
 0x639   :  { %2680 = vpow2.f32 %v1678_v21  ;;  %v2151_v62 = vadd.f32 -1.0, %v2671_v29 }
 0x63a   :  { %v2673_v38 = vpop.eup %2672 }
 0x63b   :  { %v2150_v30 = vadd.f32 -1.0, %v2673_v38  ;;  %v3481_v11 = vsel %vm1665_vm15, %v1659_v3, %v2151_v62 }
 0x63d   :  { %v3479_v41 = vsel %vm1664_vm4, %v1658_v56, %v2150_v30 }
 0x63e   :  { %2498 = vmatprep.mubr.msk.f32.mxu0 %vm1698_vm3, %v3479_v41 }
 0x63f   :  { %2499 = vmatmul.mubr.msk.f32.vlgmr.msra.gmra.mxu0 %vm1698_vm3, %v3481_v11 }
 0x640   :  { %v2675_v20 = vpop.eup %2674  ;;  %2508 = vmatpush3.msra.mxu0 %v166_v10 }
 0x641   :  { %v2153_v39 = vadd.f32 -1.0, %v2675_v20  ;;  %2509 = vmatprep.subr.mxu0 %v165_v51 }
 0x642   :  { %v2677_v25 = vpop.eup %2676  ;;  %2510 = vmatpush3.msra.mxu0 %v165_v51 }
 0x643   :  { %v2152_v59 = vadd.f32 -1.0, %v2677_v25  ;;  %v3491_v36 = vsel %vm1667_vm1, %v1661_v1, %v2153_v39  ;;  %2511 = vmatprep.subr.mxu0 %v164_v40  ;;  %v167_v1 = vld [vmem:[%s3546_s3 + $0xd8] sm:$0x7] }
 0x644   :  { %v2679_v54 = vpop.eup %2678  ;;  %2512 = vmatpush3.msra.mxu0 %v164_v40 }
 0x645   :  { %v3487_v5 = vsel %vm1666_vm0, %v1660_v55, %v2152_v59  ;;  %v2155_v53 = vadd.f32 -1.0, %v2679_v54  ;;  %2513 = vmatprep.subr.mxu0 %v163_v33 }
 0x646   :  { %v2681_v0 = vpop.eup %2680  ;;  %2501 = vmatprep.mubr.msk.f32.mxu0 %vm1698_vm3, %v3487_v5  ;;  %2514 = vmatpush3.msra.mxu0 %v163_v33 }
 0x647   :  { %2502 = vmatmul.mubr.msk.f32.gmra.mxu0 %vm1698_vm3, %v3491_v36  ;;  %v2154_v42 = vadd.f32 -1.0, %v2681_v0  ;;  %v3499_v9 = vsel %vm1669_vm5, %v1663_v18, %v2155_v53 }
 0x649   :  { %v3495_v48 = vsel %vm1668_vm2, %v1662_v37, %v2154_v42 }
 0x64a   :  { %2504 = vmatprep.mubr.msk.f32.mxu0 %vm1698_vm3, %v3495_v48 }
 0x64b   :  { %2505 = vmatmul.mubr.msk.f32.gmra.mxu0 %vm1698_vm3, %v3499_v9 }
 0x6ff   :  { %v2500_v4 = vpop.f32.mrf.mxu0 }
 0x700   :  { %v1789_v32 = vadd.f32 %v2500_v4, %v2156_v46 }
 0x701   :  { %v1783_v50 = vpop.f32.mrf.mxu0 }
 0x702   :  { %v1784_v14 = vadd.f32 %v2156_v46, %v1783_v50 }
 0x704   :  { %2682 = vtanh.f32 %v1784_v14 }
 0x705   :  { %2684 = vtanh.f32 %v1789_v32 }
 0x707   :  { %v2503_v16 = vpop.f32.mrf.mxu0 }
 0x708   :  { %v1799_v6 = vadd.f32 %v2503_v16, %v2156_v46 }
 0x709   :  { %v1793_v24 = vpop.f32.mrf.mxu0 }
 0x70a   :  { %v1794_v3 = vadd.f32 %v2156_v46, %v1793_v24 }
 0x70b   :  { %v2506_v63 = vpop.f32.mrf.mxu0 }
 0x70c   :  { %2686 = vtanh.f32 %v1794_v3  ;;  %v1809_v7 = vadd.f32 %v2506_v63, %v2156_v46 }
 0x70d   :  { %2688 = vtanh.f32 %v1799_v6  ;;  %v1803_v13 = vpop.f32.mrf.mxu0 }
 0x70e   :  { %v1804_v56 = vadd.f32 %v2156_v46, %v1803_v13 }
 0x710   :  { %2690 = vtanh.f32 %v1804_v56 }
 0x711   :  { %v2683_v19 = vpop.eup %2682  ;;  %2692 = vtanh.f32 %v1809_v7 }
 0x712   :  { %v2685_v57 = vpop.eup %2684  ;;  %2515 = vmatprep.mubr.msk.f32.mxu0 %vm1698_vm3, %v2683_v19 }
 0x713   :  { %2516 = vmatmul.mubr.msk.f32.vlgmr.msra.gmra.mxu0 %vm1698_vm3, %v2685_v57 }
 0x719   :  { %v2687_v44 = vpop.eup %2686 }
 0x71a   :  { %v2689_v26 = vpop.eup %2688  ;;  %2518 = vmatprep.mubr.msk.f32.mxu0 %vm1698_vm3, %v2687_v44 }
 0x71b   :  { %2519 = vmatmul.mubr.msk.f32.gmra.mxu0 %vm1698_vm3, %v2689_v26 }
 0x71d   :  { %v2691_v28 = vpop.eup %2690 }
 0x71e   :  { %v2693_v23 = vpop.eup %2692  ;;  %2521 = vmatprep.mubr.msk.f32.mxu0 %vm1698_vm3, %v2691_v28 }
 0x71f   :  { %2522 = vmatmul.mubr.msk.f32.gmra.mxu0 %vm1698_vm3, %v2693_v23 }
 0x7d3   :  { %v2517_v61 = vpop.f32.mrf.mxu0 }
 0x7d5   :  { %v1902_v52 = vpop.f32.mrf.mxu0 }
 0x7db   :  { %v2520_v22 = vpop.f32.mrf.mxu0 }
 0x7dd   :  { %v1912_v8 = vpop.f32.mrf.mxu0 }
 0x7df   :  { %v2523_v49 = vpop.f32.mrf.mxu0 }
 0x7e0   :  { %2525 = vmatpush3.msra.mxu1 %v2523_v49 }
 0x7e1   :  { %v1922_v58 = vpop.f32.mrf.mxu0  ;;  %2526 = vmatprep.subr.mxu1 %v2720_v2 }
 0x7e2   :  { %2527 = vmatpush3.msra.mxu1 %v1922_v58 }
 0x7e3   :  { %2528 = vmatprep.subr.mxu1 %v2720_v2 }
 0x7e4   :  { %2529 = vmatpush3.msra.mxu1 %v2520_v22 }
 0x7e5   :  { %2530 = vmatprep.subr.mxu1 %v2720_v2 }
 0x7e6   :  { %2531 = vmatpush3.msra.mxu1 %v1912_v8 }
 0x7e7   :  { %2532 = vmatprep.subr.mxu1 %v2720_v2 }
 0x7e8   :  { %2533 = vmatpush3.msra.mxu1 %v2517_v61 }
 0x7e9   :  { %2534 = vmatprep.subr.mxu1 %v2720_v2 }
 0x7ea   :  { %2535 = vmatpush3.msra.mxu1 %v1902_v52 }
 0x7eb   :  { %2537 = vmatmul.mubr.msk.f32.vlgmr.msra.gmra.mxu1 %vm1931_vm6, %v167_v1 }
 0x8ab   :  { %v2001_v12 = vpop.f32.mrf.mxu1 }
 0x8ac   :  { %v2006_v31 = vsel %vm2005_vm7, %v2001_v12, -inf }
 0x8ad   :  { %v2007_v35 = vrot.slane %v2006_v31, 4  ;;  %v2538_v43 = vpop.f32.mrf.mxu1 }
 0x8af   :  { %v2008_v45 = vmax.f32 %v2006_v31, %v2007_v35 }
 0x8b1   :  { %v2009_v55 = vrot.slane %v2008_v45, 2 }
 0x8b3   :  { %v2010_v60 = vmax.f32 %v2008_v45, %v2009_v55 }
 0x8b5   :  { %v2011_v17 = vrot.slane %v2010_v60, 1 }
 0x8b7   :  { %v2012_v15 = vmax.f32 %v2010_v60, %v2011_v17 }
 0x8b9   :  { %v2013_v34 = vsub.f32 %v2001_v12, %v2012_v15 }
 0x8bb   :  { %v2014_v18 = vmul.f32 1.442695, %v2013_v34 }
 0x8bd   :  { %2694 = vpow2.f32 %v2014_v18 }
 0x8ca   :  { %v2695_v47 = vpop.eup %2694 }
 0x8cb   :  { %v2016_v27 = vsel %vm2005_vm7, %v2695_v47, 0.0 }
 0x8cc   :  { %v2017_v37 = vrot.slane %v2016_v27, 4 }
 0x8ce   :  { %v2018_v21 = vadd.f32 %v2017_v37, %v2016_v27 }
 0x8d0   :  { %v2019_v2 = vrot.slane %v2018_v21, 2 }
 0x8d2   :  { %v2020_v29 = vadd.f32 %v2019_v2, %v2018_v21 }
 0x8d4   :  { %v2021_v38 = vrot.slane %v2020_v29, 1 }
 0x8d6   :  { %v2022_v62 = vadd.f32 %v2021_v38, %v2020_v29 }
 0x8d8   :  { %2696 = vrcp.f32 %v2022_v62 }
 0x8e5   :  { %v2697_v30 = vpop.eup %2696 }
 0x8e6   :  { %v2024_v20 = vmul.f32 %v2697_v30, %v2695_v47 }
 0x8e8   :  { %2539 = vpush %v2024_v20  ;;  %v2031_v25 = vrot.slane %v2024_v20, 1  ;;  %v2039_v39 = vrot.slane %v2024_v20, 2 }
 0x8ea   :  { %2541 = vpush %v2031_v25 }
 0x8eb   :  { %2543 = vpush %v2039_v39 }
 0x919   :  { %s2540_s3 = spop %2539 }
 0x91a   :  { %v2027_v59 = vstv %s2540_s3 }
 0x91b   :  { %s2542_s23 = spop %2541  ;;  %v2029_v54 = vmul.f32 %v2027_v59, %v3479_v41  ;;  %v2030_v53 = vmul.f32 %v2027_v59, %v3481_v11 }
 0x91c   :  { %v2033_v0 = vstv %s2542_s23  ;;  %s2544_s24 = spop %2543 }
 0x91d   :  { %v2035_v42 = vmul.f32 %v2033_v0, %v3487_v5  ;;  %v2036_v10 = vmul.f32 %v2033_v0, %v3491_v36  ;;  %v2041_v51 = vstv %s2544_s24 }
 0x91e   :  { %v2043_v46 = vmul.f32 %v2041_v51, %v3495_v48  ;;  %v2044_v4 = vmul.f32 %v2041_v51, %v3499_v9 }
 0x91f   :  { %v2037_v40 = vadd.f32 %v2035_v42, %v2029_v54  ;;  %v2038_v33 = vadd.f32 %v2036_v10, %v2030_v53 }
 0x921   :  { %v2045_v32 = vadd.f32 %v2043_v46, %v2037_v40  ;;  %v2046_v50 = vadd.f32 %v2044_v4, %v2038_v33 }
 0x923   :  { %2047 = vst.msk [vmem:[#allocation2] sm:$0xff] %vm1698_vm3, %v2045_v32  ;;  %2048 = vst.msk [vmem:[#allocation2 + $0x8] sm:$0xff] %vm1698_vm3, %v2046_v50 }
 0x924   :  { %2709 = shalt.err (!%p2706_p4)
}
 0x925   :  { %s2723_s28 = smov 128   ;;  %s2724_s1 = smov 8  }
 0x926   :  { %2060 = dma.vmem_to_hbm [thread:$0]  %s2055_s26, 256, %s3547_s4, [#allocation3], %s2723_s28, %s2723_s28, %s2724_s1  }
 0x927   :  { %2718 = dma.done.wait [#allocation3], 256  }
 0x928   :  { %2719 = vsyncadd [#allocation3], 4294967040 }
 0x929   :  { %2064 = vsyncpa [#allocation3], 1 }

</bundles_post_ra>
